<compile_context>
chip_gen: v5e
topology: v5e:2x2
jax: 0.10.0
libtpu: 0.0.40
codegen_flags: <defaults>
</compile_context>

<pallas_src>
import functools

import jax
import jax.numpy as jnp
from jax import lax
from jax.experimental import pallas as pl
from jax.experimental.pallas import tpu as pltpu

EPS = 1e-5
VMEM_LIMIT = 32 * 1024 * 1024      # safe on v5e/v6e (128 MiB) and v7x (64 MiB)


def _round_up(x, m):
    return (x + m - 1) // m * m


# --------------------------- Pallas kernels ---------------------------------

def _conv_bn_kernel(a_ref, b_ref, g_ref, beta_ref, o_ref, *, inv_m, relu):
    """Fused conv-as-matmul + training BN (+ReLU); all operands VMEM-resident.

    a: (Mp, Kp) bf16 im2col patches (zero-padded -> padded rows/cols inert)
    b: (Kp, Cp) bf16 weights, g/beta: (1, Cp) f32, output: (Mp, Cp) bf16.
    """
    y = jnp.dot(a_ref[...], b_ref[...], preferred_element_type=jnp.float32)
    s = jnp.sum(y, axis=0, keepdims=True)            # (1, Cp)
    q = jnp.sum(y * y, axis=0, keepdims=True)
    mean = s * inv_m                                  # inv_m uses the true M
    var = jnp.maximum(q * inv_m - mean * mean, 0.0)
    scale = g_ref[...] * lax.rsqrt(var + EPS)
    shift = beta_ref[...] - mean * scale
    out = y * scale + shift
    if relu:
        out = jnp.maximum(out, 0.0)
    o_ref[...] = out.astype(o_ref.dtype)


def _conv_bn_res_kernel(a_ref, b_ref, g_ref, beta_ref, r_ref, o_ref,
                        *, inv_m, relu):
    """Same as _conv_bn_kernel plus a bf16 residual slab added before ReLU."""
    y = jnp.dot(a_ref[...], b_ref[...], preferred_element_type=jnp.float32)
    s = jnp.sum(y, axis=0, keepdims=True)
    q = jnp.sum(y * y, axis=0, keepdims=True)
    mean = s * inv_m
    var = jnp.maximum(q * inv_m - mean * mean, 0.0)
    scale = g_ref[...] * lax.rsqrt(var + EPS)
    shift = beta_ref[...] - mean * scale
    out = y * scale + shift + r_ref[...].astype(jnp.float32)
    if relu:
        out = jnp.maximum(out, 0.0)
    o_ref[...] = out.astype(o_ref.dtype)


def _head_kernel(x_ref, w_ref, b_ref, o_ref, *, n, hw, classes):
    """Global average pool + Linear + Softmax on the final padded (M, Cp) slab."""
    x = x_ref[...].astype(jnp.float32)                          # (n*hw, Cp)
    pooled = jnp.mean(x.reshape(n, hw, x.shape[-1]), axis=1)    # (n, Cp)
    logits = jnp.dot(pooled.astype(jnp.bfloat16), w_ref[...],
                     preferred_element_type=jnp.float32) + b_ref[...]
    col = lax.broadcasted_iota(jnp.int32, logits.shape, 1)
    logits = jnp.where(col < classes, logits, -jnp.inf)         # mask lane pad
    m = jnp.max(logits, axis=-1, keepdims=True)
    e = jnp.exp(logits - m)
    o_ref[...] = e / jnp.sum(e, axis=-1, keepdims=True)


# --------------------------- JAX glue ----------------------------------------

def _im2col(x, kh, kw, stride, padding):
    """bf16 im2col (built from bf16 input so the kh*kw-inflated slab is bf16)."""
    N, H, W, C = x.shape
    xp = jnp.pad(x, ((0, 0), (padding, padding), (padding, padding), (0, 0)))
    OH = (H + 2 * padding - kh) // stride + 1
    OW = (W + 2 * padding - kw) // stride + 1
    cols = []
    for i in range(kh):
        for j in range(kw):
            cols.append(xp[:, i:i + stride * OH:stride, j:j + stride * OW:stride, :])
    patches = jnp.stack(cols, axis=3)                 # (N, OH, OW, kh*kw, C)
    return patches.reshape(N * OH * OW, kh * kw * C), OH, OW


def conv_bn(x, w, gamma, beta, *, stride, padding, relu=True,
            residual_slab=None, out_format="nhwc"):
    """One fused conv (no bias) + training-mode BN + optional residual + ReLU.

    Returns NHWC bf16, or (padded (Mp,Cp) bf16 slab, meta) if out_format=="padded".
    """
    kh, kw, _, cout = w.shape
    N = x.shape[0]
    patches, OH, OW = _im2col(x.astype(jnp.bfloat16), kh, kw, stride, padding)
    M, K = patches.shape
    Mp, Kp, Cp = _round_up(M, 8), _round_up(K, 128), _round_up(cout, 128)

    a = jnp.pad(patches, ((0, Mp - M), (0, Kp - K)))                       # bf16
    b = jnp.pad(w.reshape(K, cout).astype(jnp.bfloat16),
                ((0, Kp - K), (0, Cp - cout)))
    g = jnp.pad(gamma, (0, Cp - cout)).reshape(1, Cp).astype(jnp.float32)
    bt = jnp.pad(beta, (0, Cp - cout)).reshape(1, Cp).astype(jnp.float32)
    inv_m = 1.0 / float(M)

    if residual_slab is None:
        kernel = functools.partial(_conv_bn_kernel, inv_m=inv_m, relu=relu)
        args = (a, b, g, bt)
    else:
        assert residual_slab.shape == (Mp, Cp), (residual_slab.shape, (Mp, Cp))
        kernel = functools.partial(_conv_bn_res_kernel, inv_m=inv_m, relu=relu)
        args = (a, b, g, bt, residual_slab)

    slab = pl.pallas_call(
        kernel,
        out_shape=jax.ShapeDtypeStruct((Mp, Cp), jnp.bfloat16),
        in_specs=[pl.BlockSpec(memory_space=pltpu.MemorySpace.VMEM)] * len(args),
        out_specs=pl.BlockSpec(memory_space=pltpu.MemorySpace.VMEM),
        compiler_params=pltpu.CompilerParams(vmem_limit_bytes=VMEM_LIMIT),
        cost_estimate=pl.CostEstimate(
            flops=2 * Mp * Kp * Cp + 10 * Mp * Cp,
            transcendentals=Cp,
            bytes_accessed=Mp * Kp * 2 + Kp * Cp * 2 + Mp * Cp * 2),
    )(*args)

    if out_format == "padded":
        return slab, (N, OH, OW, cout, M)
    return slab[:M, :cout].reshape(N, OH, OW, cout)


def maxpool_3x3_s2_p1(x):
    """3x3 / stride-2 / pad-1 max pool as a fused jnp.maximum tree (bf16)."""
    N, H, W, C = x.shape
    xp = jnp.pad(x, ((0, 0), (1, 1), (1, 1), (0, 0)), constant_values=-jnp.inf)
    OH = (H + 2 - 3) // 2 + 1
    OW = (W + 2 - 3) // 2 + 1
    out = None
    for i in range(3):
        for j in range(3):
            tap = xp[:, i:i + 2 * OH:2, j:j + 2 * OW:2, :]
            out = tap if out is None else jnp.maximum(out, tap)
    return out


def head(slab, meta, w_fc, b_fc):
    """adaptive_avg_pool2d(1) + flatten + Linear + Softmax on the padded slab."""
    N, OH, OW, cout, M = meta
    Mp, Cp = slab.shape
    if Mp != M:                       # drop padded rows (no-op at these sizes)
        slab = slab[:M]
    HW = OH * OW
    classes = w_fc.shape[1]
    CLS_P = _round_up(classes, 128)

    wp = jnp.pad(w_fc.astype(jnp.bfloat16),
                 ((0, Cp - w_fc.shape[0]), (0, CLS_P - classes)))
    bp = jnp.pad(b_fc, (0, CLS_P - classes)).reshape(1, CLS_P).astype(jnp.float32)

    out = pl.pallas_call(
        functools.partial(_head_kernel, n=N, hw=HW, classes=classes),
        out_shape=jax.ShapeDtypeStruct((N, CLS_P), jnp.float32),
        in_specs=[pl.BlockSpec(memory_space=pltpu.MemorySpace.VMEM)] * 3,
        out_specs=pl.BlockSpec(memory_space=pltpu.MemorySpace.VMEM),
        compiler_params=pltpu.CompilerParams(vmem_limit_bytes=VMEM_LIMIT),
    )(slab, wp, bp)
    return out[:, :classes]


# --------------------------- parameters / model -----------------------------

def init_params(key, blocks=(1, 1), class_num=10):
    keys = iter(jax.random.split(key, 64))

    def conv_w(shape):  # xavier_normal_ equivalent std
        kh, kw, cin, cout = shape
        fan_in, fan_out = cin * kh * kw, cout * kh * kw
        std = (2.0 / (fan_in + fan_out)) ** 0.5
        return std * jax.random.normal(next(keys), shape, jnp.float32)

    params = {
        'pre_conv': conv_w((7, 7, 3, 64)),
        'pre_gamma': jnp.ones((64,), jnp.float32),
        'pre_beta': jnp.zeros((64,), jnp.float32),
    }

    block_params = []
    out_f = 64
    for stage_id, iterations in enumerate(blocks):
        for block_id in range(iterations):
            if block_id == 0 and stage_id > 0:
                in_f = out_f * 1 // 2           # per_block_exp = 1
            else:
                in_f = out_f
            stride = 2 if (stage_id > 0 and block_id == 0) else 1
            bp = {
                'conv1': conv_w((3, 3, in_f, out_f)),
                'bn1_g': jnp.ones((out_f,), jnp.float32),
                'bn1_b': jnp.zeros((out_f,), jnp.float32),
                'conv2': conv_w((3, 3, out_f, out_f)),
                'bn2_g': jnp.ones((out_f,), jnp.float32),
                'bn2_b': jnp.zeros((out_f,), jnp.float32),
                'stride': stride,
            }
            if stride != 1 or in_f != out_f:
                bp['down_conv'] = conv_w((1, 1, in_f, out_f))
                bp['down_g'] = jnp.ones((out_f,), jnp.float32)
                bp['down_b'] = jnp.zeros((out_f,), jnp.float32)
            block_params.append(bp)
        if stage_id != len(blocks) - 1:
            out_f *= 2
    params['blocks'] = block_params
    # nn.Linear(out_f * per_block_exp, class_num): normal(0, 0.01), zero bias
    params['fc_w'] = 0.01 * jax.random.normal(next(keys), (out_f, class_num), jnp.float32)
    params['fc_b'] = jnp.zeros((class_num,), jnp.float32)
    return params


def resnet_forward(params, x_nchw):
    # NCHW -> NHWC, bf16 activations end-to-end (f32 math inside the kernels).
    x = jnp.transpose(x_nchw, (0, 2, 3, 1)).astype(jnp.bfloat16)

    # pre: Conv2d(3,64,7,stride=2,pad=3,bias=False) + BN + ReLU + MaxPool(3,2,1)
    x = conv_bn(x, params['pre_conv'], params['pre_gamma'], params['pre_beta'],
                stride=2, padding=3, relu=True)
    x = maxpool_3x3_s2_p1(x)

    # residual stages
    slab, meta = None, None
    n_blocks = len(params['blocks'])
    for idx, bp in enumerate(params['blocks']):
        last = (idx == n_blocks - 1)
        out1 = conv_bn(x, bp['conv1'], bp['bn1_g'], bp['bn1_b'],
                       stride=bp['stride'], padding=1, relu=True)
        if 'down_conv' in bp:
            # downsample output stays in its padded (Mp, Cp) slab form
            identity_slab, _ = conv_bn(x, bp['down_conv'], bp['down_g'],
                                       bp['down_b'], stride=bp['stride'],
                                       padding=0, relu=False, out_format="padded")
        else:
            N, H, W, C = x.shape
            M = N * H * W
            Mp, Cp = _round_up(M, 8), _round_up(C, 128)
            identity_slab = jnp.pad(x.reshape(M, C), ((0, Mp - M), (0, Cp - C)))
        res = conv_bn(out1, bp['conv2'], bp['bn2_g'], bp['bn2_b'],
                      stride=1, padding=1, relu=True,
                      residual_slab=identity_slab,
                      out_format="padded" if last else "nhwc")
        if last:
            slab, meta = res
        else:
            x = res

    # include_top head consumes the final padded slab directly.
    return head(slab, meta, params['fc_w'], params['fc_b'])


if __name__ == "__main__":
    key = jax.random.PRNGKey(0)
    k_param, k_x = jax.random.split(key)
    params = init_params(k_param, blocks=(1, 1), class_num=10)
    x = jax.random.normal(k_x, (2, 3, 32, 32), jnp.float32)   # NCHW like PyTorch
    probs = resnet_forward(params, x)
    probs = jax.block_until_ready(probs)
    assert probs.shape == (2, 10)
    assert jnp.allclose(jnp.sum(probs, axis=-1), 1.0, atol=1e-4)
    print("KERNEL_OK")
</pallas_src>

<mosaic_0001>
module attributes {stable_mosaic.version = 11 : i64} {
  func.func @_conv_bn_kernel(%arg0: memref<512x256xbf16, #tpu.memory_space<vmem>>, %arg1: memref<256x128xbf16, #tpu.memory_space<vmem>>, %arg2: memref<1x128xf32, #tpu.memory_space<vmem>>, %arg3: memref<1x128xf32, #tpu.memory_space<vmem>>, %arg4: memref<512x128xbf16, #tpu.memory_space<vmem>>) attributes {dimension_semantics = [], scalar_prefetch = 0 : i64, scratch_operands = 0 : i64, tpu.core_type = #tpu.core_type<tc>} {
    %c0 = arith.constant 0 : index
    %c0_0 = arith.constant 0 : index
    %0 = vector.load %arg0[%c0, %c0_0] : memref<512x256xbf16, #tpu.memory_space<vmem>>, vector<512x256xbf16>
    %c0_1 = arith.constant 0 : index
    %c0_2 = arith.constant 0 : index
    %1 = vector.load %arg1[%c0_1, %c0_2] : memref<256x128xbf16, #tpu.memory_space<vmem>>, vector<256x128xbf16>
    %cst = arith.constant dense<0.000000e+00> : vector<512x128xf32>
    %2 = tpu.matmul %0, %1, %cst {dimension_numbers = #tpu.dot_dimension_numbers<[1], [0], [0], [1], [0, 0, 1, 1], [], []>} : vector<512x256xbf16>, vector<256x128xbf16>, vector<512x128xf32> -> vector<512x128xf32>
    %cst_3 = arith.constant dense<0.000000e+00> : vector<128xf32>
    %3 = vector.multi_reduction <add>, %2, %cst_3 [0] : vector<512x128xf32> to vector<128xf32>
    %4 = vector.shape_cast %3 : vector<128xf32> to vector<1x128xf32>
    %5 = arith.mulf %2, %2 : vector<512x128xf32>
    %cst_4 = arith.constant dense<0.000000e+00> : vector<128xf32>
    %6 = vector.multi_reduction <add>, %5, %cst_4 [0] : vector<512x128xf32> to vector<128xf32>
    %7 = vector.shape_cast %6 : vector<128xf32> to vector<1x128xf32>
    %cst_5 = arith.constant 0.001953125 : f32
    %8 = vector.broadcast %cst_5 : f32 to vector<1x128xf32>
    %9 = arith.mulf %4, %8 : vector<1x128xf32>
    %cst_6 = arith.constant 0.001953125 : f32
    %10 = vector.broadcast %cst_6 : f32 to vector<1x128xf32>
    %11 = arith.mulf %7, %10 : vector<1x128xf32>
    %12 = arith.mulf %9, %9 : vector<1x128xf32>
    %13 = arith.subf %11, %12 : vector<1x128xf32>
    %cst_7 = arith.constant 0.000000e+00 : f32
    %14 = vector.broadcast %cst_7 : f32 to vector<1x128xf32>
    %15 = arith.maximumf %13, %14 : vector<1x128xf32>
    %c0_8 = arith.constant 0 : index
    %c0_9 = arith.constant 0 : index
    %16 = vector.load %arg2[%c0_8, %c0_9] : memref<1x128xf32, #tpu.memory_space<vmem>>, vector<1x128xf32>
    %cst_10 = arith.constant 9.99999974E-6 : f32
    %17 = vector.broadcast %cst_10 : f32 to vector<1x128xf32>
    %18 = arith.addf %15, %17 : vector<1x128xf32>
    %19 = math.rsqrt %18 : vector<1x128xf32>
    %20 = arith.mulf %16, %19 : vector<1x128xf32>
    %c0_11 = arith.constant 0 : index
    %c0_12 = arith.constant 0 : index
    %21 = vector.load %arg3[%c0_11, %c0_12] : memref<1x128xf32, #tpu.memory_space<vmem>>, vector<1x128xf32>
    %22 = arith.mulf %9, %20 : vector<1x128xf32>
    %23 = arith.subf %21, %22 : vector<1x128xf32>
    %24 = vector.broadcast %20 : vector<1x128xf32> to vector<512x128xf32>
    %25 = arith.mulf %2, %24 : vector<512x128xf32>
    %26 = vector.broadcast %23 : vector<1x128xf32> to vector<512x128xf32>
    %27 = arith.addf %25, %26 : vector<512x128xf32>
    %cst_13 = arith.constant 0.000000e+00 : f32
    %28 = vector.broadcast %cst_13 : f32 to vector<512x128xf32>
    %29 = arith.maximumf %27, %28 : vector<512x128xf32>
    %30 = arith.truncf %29 : vector<512x128xf32> to vector<512x128xbf16>
    %c0_14 = arith.constant 0 : index
    %c0_15 = arith.constant 0 : index
    %31 = vector.load %arg4[%c0_14, %c0_15] : memref<512x128xbf16, #tpu.memory_space<vmem>>, vector<512x128xbf16>
    tpu.vector_store %arg4[%c0_14, %c0_15], %30 {strides = array<i32>} : memref<512x128xbf16, #tpu.memory_space<vmem>>, vector<512x128xbf16>,
    return
  }
}

</mosaic_0001>

<bundles_post_ra>
// kernel: tpu_custom_call.1
= control target key start
LH: loop header
LB: loop body
LE: loop exit
PB: predicated region body
PF: predicated region fallthrough
CT: control target
= control target key end

     0   :  { %9 = vsyncpa [#allocation3], 0  ;;  %s3068_s0 = inlined_call_operand.hbm [shape: bf16[512,256], index: 0, kind: input, shape index: {}]   ;;  %s3069_s1 = inlined_call_operand.hbm [shape: bf16[256,128], index: 1, kind: input, shape index: {}]   ;;  %s3070_s2 = inlined_call_operand.vmem [shape: f32[1,128], index: 2, kind: input, shape index: {}]   ;;  %s3071_s3 = inlined_call_operand.vmem [shape: f32[1,128], index: 3, kind: input, shape index: {}]   ;;  %s3072_s4 = inlined_call_operand.hbm [shape: bf16[512,128], index: 4, kind: output, shape index: {}]  }
   0x1   :  { %10 = vsyncpa [#allocation6], 0 }
   0x2   :  { %11 = vsyncpa [#allocation4], 0  ;;  %s16_s17 = sshll.u32 %s3068_s0, 4  ;;  %s2163_s18 = smov [#allocation2]   ;;  %s17_s17 = int_to_ptr.hbm [resolvable:$true] %s16_s17 }
   0x3   :  { %s18_s19 = sshll.u32 %s2163_s18, 4  ;;  %s29_s22 = sshll.u32 %s3069_s1, 4  ;;  %s19_s19 = int_to_ptr.vmem [resolvable:$true] %s18_s19  ;;  %s30_s22 = int_to_ptr.hbm [resolvable:$true] %s29_s22 }
   0x4   :  { %s2164_s23 = smov 128   ;;  %s2165_s24 = smov 8  }
   0x5   :  { %24 = dma.hbm_to_vmem [thread:$0]  %s17_s17, 8192, %s19_s19, [#allocation3], %s2164_s23, %s2164_s23, %s2165_s24  }
   0x6   :  { %s2166_s25 = smov [#allocation5]   ;;  %s2167_s27 = smov 64  }
   0x7   :  { %s31_s26 = sshll.u32 %s2166_s25, 4  ;;  %s2168_s28 = smov 4   ;;  %s32_s26 = int_to_ptr.vmem [resolvable:$true] %s31_s26 }
   0x8   :  { %37 = dma.hbm_to_vmem [thread:$0]  %s30_s22, 2048, %s32_s26, [#allocation6], %s2167_s27, %s2167_s27, %s2168_s28  }
   0x9   :  { %2157 = dma.done.wait [#allocation3], 8192  }
   0xa   :  { %2158 = vsyncadd [#allocation3], 4294959104 }
   0xb   :  { %2159 = dma.done.wait [#allocation6], 2048  }
   0xc   :  { %2160 = vsyncadd [#allocation6], 4294965248  ;;  %v1860_v0 = vld [vmem:[#allocation5 + $0x38] sm:$0xff]  ;;  %v1859_v2 = vld [vmem:[#allocation5 + $0x30] sm:$0xff]  ;;  %s1455_s7 = sshll.u32 %s3072_s4, 4  ;;  %s1456_s7 = int_to_ptr.hbm [resolvable:$true] %s1455_s7 }
   0xd   :  { %v1868_v1 = vld [vmem:[#allocation5 + $0x78] sm:$0xff]  ;;  %562 = vmatpush.bf16.msra.mxu0 %v1860_v0  ;;  %v1867_v3 = vld [vmem:[#allocation5 + $0x70] sm:$0xff]  ;;  %2060 = vmatpush.bf16.msra.mxu2 %v1860_v0  ;;  %v1858_v4 = vld [vmem:[#allocation5 + $0x28] sm:$0xff] }
   0xe   :  { %731 = vmatpush.bf16.msra.mxu1 %v1868_v1  ;;  %2068 = vmatpush.bf16.msra.mxu3 %v1868_v1  ;;  %v1866_v5 = vld [vmem:[#allocation5 + $0x68] sm:$0xff]  ;;  %v1857_v6 = vld [vmem:[#allocation5 + $0x20] sm:$0xff]  ;;  %v1856_v8 = vld [vmem:[#allocation5 + $0x18] sm:$0xff] }
   0xf   :  { %v1865_v7 = vld [vmem:[#allocation5 + $0x60] sm:$0xff]  ;;  %v1864_v9 = vld [vmem:[#allocation5 + $0x58] sm:$0xff]  ;;  %v1855_v10 = vld [vmem:[#allocation5 + $0x10] sm:$0xff] }
  0x10   :  { %v1863_v11 = vld [vmem:[#allocation5 + $0x50] sm:$0xff]  ;;  %v1854_v12 = vld [vmem:[#allocation5 + $0x8] sm:$0xff]  ;;  %v1853_v14 = vld [vmem:[#allocation5] sm:$0xff] }
  0x11   :  { %563 = vmatpush.bf16.msra.mxu0 %v1859_v2  ;;  %2061 = vmatpush.bf16.msra.mxu2 %v1859_v2  ;;  %v1862_v13 = vld [vmem:[#allocation5 + $0x48] sm:$0xff]  ;;  %v1861_v15 = vld [vmem:[#allocation5 + $0x40] sm:$0xff]  ;;  %v1479_v22 = vld [vmem:[#allocation2 + $0x10] sm:$0xf] }
  0x12   :  { %732 = vmatpush.bf16.msra.mxu1 %v1867_v3  ;;  %2069 = vmatpush.bf16.msra.mxu3 %v1867_v3  ;;  %v1471_v16 = vld [vmem:[#allocation2] sm:$0xf]  ;;  %v1790_v17 = vld [vmem:[#allocation2 + $0x4] sm:$0xf0]  ;;  %v1789_v18 = vld [vmem:[#allocation2 + $0x4] sm:$0xf] }
  0x13   :  { %v1473_v19 = vld [vmem:[#allocation2 + $0x8] sm:$0xf0]  ;;  %v1472_v20 = vor.u32 %v1790_v17, %v1471_v16  ;;  %v1792_v23 = vld [vmem:[#allocation2 + $0x14] sm:$0xf0]  ;;  %v1791_v24 = vld [vmem:[#allocation2 + $0x14] sm:$0xf] }
  0x14   :  { %v1476_v21 = vor.u32 %v1789_v18, %v1473_v19  ;;  %v1481_v25 = vld [vmem:[#allocation2 + $0x18] sm:$0xf0]  ;;  %v1480_v26 = vor.u32 %v1792_v23, %v1479_v22  ;;  %v1599_v28 = vld [vmem:[#allocation2 + $0x100] sm:$0xf]  ;;  %v1822_v29 = vld [vmem:[#allocation2 + $0x104] sm:$0xf0] }
  0x15   :  { %564 = vmatpush.bf16.msra.mxu0 %v1858_v4  ;;  %2062 = vmatpush.bf16.msra.mxu2 %v1858_v4  ;;  %v1484_v27 = vor.u32 %v1791_v24, %v1481_v25  ;;  %v1821_v30 = vld [vmem:[#allocation2 + $0x104] sm:$0xf]  ;;  %v1600_v31 = vor.u32 %v1822_v29, %v1599_v28  ;;  %v1601_v32 = vld [vmem:[#allocation2 + $0x108] sm:$0xf0]  ;;  %v1487_v34 = vld [vmem:[#allocation2 + $0x20] sm:$0xf] }
  0x16   :  { %733 = vmatpush.bf16.msra.mxu1 %v1866_v5  ;;  %2070 = vmatpush.bf16.msra.mxu3 %v1866_v5  ;;  %v1604_v33 = vor.u32 %v1821_v30, %v1601_v32  ;;  %v1794_v35 = vld [vmem:[#allocation2 + $0x24] sm:$0xf0]  ;;  %v1793_v36 = vld [vmem:[#allocation2 + $0x24] sm:$0xf]  ;;  %v1489_v37 = vld [vmem:[#allocation2 + $0x28] sm:$0xf0] }
  0x17   :  { %v1488_v38 = vor.u32 %v1794_v35, %v1487_v34  ;;  %v1492_v39 = vor.u32 %v1793_v36, %v1489_v37  ;;  %v1607_v40 = vld [vmem:[#allocation2 + $0x110] sm:$0xf]  ;;  %v1824_v41 = vld [vmem:[#allocation2 + $0x114] sm:$0xf0]  ;;  %v1823_v42 = vld [vmem:[#allocation2 + $0x114] sm:$0xf] }
  0x18   :  { %v1608_v43 = vor.u32 %v1824_v41, %v1607_v40  ;;  %v1609_v44 = vld [vmem:[#allocation2 + $0x118] sm:$0xf0]  ;;  %v1495_v46 = vld [vmem:[#allocation2 + $0x30] sm:$0xf]  ;;  %v1796_v47 = vld [vmem:[#allocation2 + $0x34] sm:$0xf0] }
  0x19   :  { %565 = vmatpush.bf16.msra.mxu0 %v1857_v6  ;;  %2063 = vmatpush.bf16.msra.mxu2 %v1857_v6  ;;  %v1612_v45 = vor.u32 %v1823_v42, %v1609_v44  ;;  %v1795_v48 = vld [vmem:[#allocation2 + $0x34] sm:$0xf]  ;;  %v1497_v49 = vld [vmem:[#allocation2 + $0x38] sm:$0xf0]  ;;  %v1496_v50 = vor.u32 %v1796_v47, %v1495_v46  ;;  %v1615_v52 = vld [vmem:[#allocation2 + $0x120] sm:$0xf] }
  0x1a   :  { %734 = vmatpush.bf16.msra.mxu1 %v1865_v7  ;;  %2071 = vmatpush.bf16.msra.mxu3 %v1865_v7  ;;  %v1500_v51 = vor.u32 %v1795_v48, %v1497_v49  ;;  %v1826_v53 = vld [vmem:[#allocation2 + $0x124] sm:$0xf0]  ;;  %v1825_v54 = vld [vmem:[#allocation2 + $0x124] sm:$0xf]  ;;  %v1617_v56 = vld [vmem:[#allocation2 + $0x128] sm:$0xf0] }
  0x1b   :  { %v1616_v55 = vor.u32 %v1826_v53, %v1615_v52  ;;  %v1620_v57 = vor.u32 %v1825_v54, %v1617_v56  ;;  %v1503_v58 = vld [vmem:[#allocation2 + $0x40] sm:$0xf]  ;;  %v1798_v59 = vld [vmem:[#allocation2 + $0x44] sm:$0xf0]  ;;  %v1797_v60 = vld [vmem:[#allocation2 + $0x44] sm:$0xf] }
  0x1c   :  { %v1505_v61 = vld [vmem:[#allocation2 + $0x48] sm:$0xf0]  ;;  %v1504_v62 = vor.u32 %v1798_v59, %v1503_v58  ;;  %v1623_v0 = vld [vmem:[#allocation2 + $0x130] sm:$0xf]  ;;  %v1828_v1 = vld [vmem:[#allocation2 + $0x134] sm:$0xf0] }
  0x1d   :  { %566 = vmatpush.bf16.msra.mxu0 %v1856_v8  ;;  %2064 = vmatpush.bf16.msra.mxu2 %v1856_v8  ;;  %v1508_v63 = vor.u32 %v1797_v60, %v1505_v61  ;;  %v1827_v2 = vld [vmem:[#allocation2 + $0x134] sm:$0xf]  ;;  %v1624_v3 = vor.u32 %v1828_v1, %v1623_v0  ;;  %v1625_v4 = vld [vmem:[#allocation2 + $0x138] sm:$0xf0]  ;;  %v1511_v6 = vld [vmem:[#allocation2 + $0x50] sm:$0xf] }
  0x1e   :  { %735 = vmatpush.bf16.msra.mxu1 %v1864_v9  ;;  %2072 = vmatpush.bf16.msra.mxu3 %v1864_v9  ;;  %v1628_v5 = vor.u32 %v1827_v2, %v1625_v4  ;;  %v1800_v7 = vld [vmem:[#allocation2 + $0x54] sm:$0xf0]  ;;  %v1799_v8 = vld [vmem:[#allocation2 + $0x54] sm:$0xf]  ;;  %v1513_v9 = vld [vmem:[#allocation2 + $0x58] sm:$0xf0] }
  0x1f   :  { %v1633_v16 = vld [vmem:[#allocation2 + $0x148] sm:$0xf0]  ;;  %v1519_v18 = vld [vmem:[#allocation2 + $0x60] sm:$0xf]  ;;  %v1802_v19 = vld [vmem:[#allocation2 + $0x64] sm:$0xf0] }
  0x20   :  { %v1520_v22 = vor.u32 %v1802_v19, %v1519_v18  ;;  %v1639_v24 = vld [vmem:[#allocation2 + $0x150] sm:$0xf]  ;;  %v1832_v25 = vld [vmem:[#allocation2 + $0x154] sm:$0xf0]  ;;  %v1641_v28 = vld [vmem:[#allocation2 + $0x158] sm:$0xf0] }
  0x21   :  { %567 = vmatpush.bf16.msra.mxu0 %v1855_v10  ;;  %2065 = vmatpush.bf16.msra.mxu2 %v1855_v10  ;;  %v1512_v10 = vor.u32 %v1800_v7, %v1511_v6  ;;  %v1527_v30 = vld [vmem:[#allocation2 + $0x70] sm:$0xf]  ;;  %v1803_v32 = vld [vmem:[#allocation2 + $0x74] sm:$0xf]  ;;  %v1647_v36 = vld [vmem:[#allocation2 + $0x160] sm:$0xf] }
  0x22   :  { %736 = vmatpush.bf16.msra.mxu1 %v1863_v11  ;;  %2073 = vmatpush.bf16.msra.mxu3 %v1863_v11  ;;  %v1516_v11 = vor.u32 %v1799_v8, %v1513_v9  ;;  %v1834_v37 = vld [vmem:[#allocation2 + $0x164] sm:$0xf0]  ;;  %v1649_v40 = vld [vmem:[#allocation2 + $0x168] sm:$0xf0]  ;;  %v1535_v42 = vld [vmem:[#allocation2 + $0x80] sm:$0xf] }
  0x23   :  { %v1805_v44 = vld [vmem:[#allocation2 + $0x84] sm:$0xf]  ;;  %v1836_v52 = vld [vmem:[#allocation2 + $0x174] sm:$0xf0]  ;;  %v1835_v53 = vld [vmem:[#allocation2 + $0x174] sm:$0xf] }
  0x24   :  { %v1543_v60 = vld [vmem:[#allocation2 + $0x90] sm:$0xf]  ;;  %v1808_v61 = vld [vmem:[#allocation2 + $0x94] sm:$0xf0]  ;;  %v1838_v6 = vld [vmem:[#allocation2 + $0x184] sm:$0xf0] }
  0x25   :  { %568 = vmatpush.bf16.msra.mxu0 %v1854_v12  ;;  %2066 = vmatpush.bf16.msra.mxu2 %v1854_v12  ;;  %v1631_v12 = vld [vmem:[#allocation2 + $0x140] sm:$0xf]  ;;  %v1544_v0 = vor.u32 %v1808_v61, %v1543_v60  ;;  %v1837_v7 = vld [vmem:[#allocation2 + $0x184] sm:$0xf]  ;;  %v1665_v9 = vld [vmem:[#allocation2 + $0x188] sm:$0xf0] }
  0x26   :  { %737 = vmatpush.bf16.msra.mxu1 %v1862_v13  ;;  %2074 = vmatpush.bf16.msra.mxu3 %v1862_v13  ;;  %v1830_v13 = vld [vmem:[#allocation2 + $0x144] sm:$0xf0]  ;;  %v1809_v18 = vld [vmem:[#allocation2 + $0xa4] sm:$0xf]  ;;  %v1553_v19 = vld [vmem:[#allocation2 + $0xa8] sm:$0xf0] }
  0x29   :  { %569 = vmatpush.bf16.msra.mxu0 %v1853_v14  ;;  %2067 = vmatpush.bf16.msra.mxu2 %v1853_v14  ;;  %v1829_v14 = vld [vmem:[#allocation2 + $0x144] sm:$0xf] }
  0x2a   :  { %738 = vmatpush.bf16.msra.mxu1 %v1861_v15  ;;  %2075 = vmatpush.bf16.msra.mxu3 %v1861_v15  ;;  %v1632_v15 = vor.u32 %v1830_v13, %v1631_v12  ;;  %v1636_v17 = vor.u32 %v1829_v14, %v1633_v16  ;;  %v1551_v16 = vld [vmem:[#allocation2 + $0xa0] sm:$0xf] }
  0x2c   :  { %570 = vmatmul.bf16.vlgmr.msra.gmra.mxu0 %v1472_v20  ;;  %650 = vmatmul.bf16.vlgmr.msra.gmra.mxu2 %v1600_v31  ;;  %v1801_v20 = vld [vmem:[#allocation2 + $0x64] sm:$0xf]  ;;  %v1804_v31 = vld [vmem:[#allocation2 + $0x74] sm:$0xf0] }
  0x2d   :  { %739 = vmatmul.bf16.vlgmr.msra.gmra.mxu1 %v1476_v21  ;;  %819 = vmatmul.bf16.vlgmr.msra.gmra.mxu3 %v1604_v33  ;;  %v1521_v21 = vld [vmem:[#allocation2 + $0x68] sm:$0xf0]  ;;  %v1529_v33 = vld [vmem:[#allocation2 + $0x78] sm:$0xf0]  ;;  %v1528_v34 = vor.u32 %v1804_v31, %v1527_v30  ;;  %v1840_v30 = vld [vmem:[#allocation2 + $0x194] sm:$0xf0] }
  0x2e   :  { %v1524_v23 = vor.u32 %v1801_v20, %v1521_v21  ;;  %v1532_v35 = vor.u32 %v1803_v32, %v1529_v33  ;;  %v1839_v31 = vld [vmem:[#allocation2 + $0x194] sm:$0xf]  ;;  %v1673_v33 = vld [vmem:[#allocation2 + $0x198] sm:$0xf0] }
  0x3c   :  { %575 = vmatmul.bf16.gmra.mxu0 %v1480_v26  ;;  %655 = vmatmul.bf16.gmra.mxu2 %v1608_v43  ;;  %v1831_v26 = vld [vmem:[#allocation2 + $0x154] sm:$0xf]  ;;  %v1806_v43 = vld [vmem:[#allocation2 + $0x84] sm:$0xf0] }
  0x3d   :  { %744 = vmatmul.bf16.gmra.mxu1 %v1484_v27  ;;  %824 = vmatmul.bf16.gmra.mxu3 %v1612_v45  ;;  %v1640_v27 = vor.u32 %v1832_v25, %v1639_v24  ;;  %v1644_v29 = vor.u32 %v1831_v26, %v1641_v28  ;;  %v1537_v45 = vld [vmem:[#allocation2 + $0x88] sm:$0xf0]  ;;  %v1536_v46 = vor.u32 %v1806_v43, %v1535_v42  ;;  %v1811_v42 = vld [vmem:[#allocation2 + $0xb4] sm:$0xf]  ;;  %v1561_v43 = vld [vmem:[#allocation2 + $0xb8] sm:$0xf0] }
  0x3e   :  { %v1540_v47 = vor.u32 %v1805_v44, %v1537_v45 }
  0x4c   :  { %580 = vmatmul.bf16.gmra.mxu0 %v1488_v38  ;;  %660 = vmatmul.bf16.gmra.mxu2 %v1616_v55  ;;  %v1833_v38 = vld [vmem:[#allocation2 + $0x164] sm:$0xf]  ;;  %v1657_v55 = vld [vmem:[#allocation2 + $0x178] sm:$0xf0] }
  0x4d   :  { %749 = vmatmul.bf16.gmra.mxu1 %v1492_v39  ;;  %829 = vmatmul.bf16.gmra.mxu3 %v1620_v57  ;;  %v1648_v39 = vor.u32 %v1834_v37, %v1647_v36  ;;  %v1652_v41 = vor.u32 %v1833_v38, %v1649_v40  ;;  %v1660_v56 = vor.u32 %v1835_v53, %v1657_v55  ;;  %v1559_v40 = vld [vmem:[#allocation2 + $0xb0] sm:$0xf]  ;;  %v1842_v55 = vld [vmem:[#allocation2 + $0x1a4] sm:$0xf0] }
  0x5c   :  { %585 = vmatmul.bf16.gmra.mxu0 %v1496_v50  ;;  %665 = vmatmul.bf16.gmra.mxu2 %v1624_v3 }
  0x5d   :  { %754 = vmatmul.bf16.gmra.mxu1 %v1500_v51  ;;  %834 = vmatmul.bf16.gmra.mxu3 %v1628_v5  ;;  %v1655_v51 = vld [vmem:[#allocation2 + $0x170] sm:$0xf]  ;;  %v1663_v5 = vld [vmem:[#allocation2 + $0x180] sm:$0xf] }
  0x5e   :  { %v1656_v54 = vor.u32 %v1836_v52, %v1655_v51  ;;  %v1664_v8 = vor.u32 %v1838_v6, %v1663_v5  ;;  %v1813_v5 = vld [vmem:[#allocation2 + $0xc4] sm:$0xf]  ;;  %v1569_v6 = vld [vmem:[#allocation2 + $0xc8] sm:$0xf0] }
  0x6c   :  { %590 = vmatmul.bf16.gmra.mxu0 %v1504_v62  ;;  %670 = vmatmul.bf16.gmra.mxu2 %v1632_v15  ;;  %v1807_v62 = vld [vmem:[#allocation2 + $0x94] sm:$0xf] }
  0x6d   :  { %759 = vmatmul.bf16.gmra.mxu1 %v1508_v63  ;;  %839 = vmatmul.bf16.gmra.mxu3 %v1636_v17  ;;  %v1545_v63 = vld [vmem:[#allocation2 + $0x98] sm:$0xf0]  ;;  %v1810_v17 = vld [vmem:[#allocation2 + $0xa4] sm:$0xf0] }
  0x6e   :  { %v1548_v1 = vor.u32 %v1807_v62, %v1545_v63  ;;  %v1552_v21 = vor.u32 %v1810_v17, %v1551_v16  ;;  %v1687_v17 = vld [vmem:[#allocation2 + $0x1b0] sm:$0xf] }
  0x7c   :  { %595 = vmatmul.bf16.gmra.mxu0 %v1512_v10  ;;  %675 = vmatmul.bf16.gmra.mxu2 %v1640_v27  ;;  %v1668_v10 = vor.u32 %v1837_v7, %v1665_v9  ;;  %v1572_v9 = vor.u32 %v1813_v5, %v1569_v6 }
  0x7d   :  { %764 = vmatmul.bf16.gmra.mxu1 %v1516_v11  ;;  %844 = vmatmul.bf16.gmra.mxu3 %v1644_v29  ;;  %v1671_v29 = vld [vmem:[#allocation2 + $0x190] sm:$0xf] }
  0x7e   :  { %v1672_v32 = vor.u32 %v1840_v30, %v1671_v29 }
  0x8c   :  { %600 = vmatmul.bf16.gmra.mxu0 %v1520_v22  ;;  %680 = vmatmul.bf16.gmra.mxu2 %v1648_v39  ;;  %v1556_v22 = vor.u32 %v1809_v18, %v1553_v19  ;;  %v1844_v18 = vld [vmem:[#allocation2 + $0x1b4] sm:$0xf0]  ;;  %v1843_v19 = vld [vmem:[#allocation2 + $0x1b4] sm:$0xf] }
  0x8d   :  { %769 = vmatmul.bf16.gmra.mxu1 %v1524_v23  ;;  %849 = vmatmul.bf16.gmra.mxu3 %v1652_v41  ;;  %v1812_v41 = vld [vmem:[#allocation2 + $0xb4] sm:$0xf0] }
  0x8e   :  { %v1560_v45 = vor.u32 %v1812_v41, %v1559_v40 }
  0x9c   :  { %605 = vmatmul.bf16.gmra.mxu0 %v1528_v34  ;;  %685 = vmatmul.bf16.gmra.mxu2 %v1656_v54  ;;  %v1676_v34 = vor.u32 %v1839_v31, %v1673_v33  ;;  %v1679_v54 = vld [vmem:[#allocation2 + $0x1a0] sm:$0xf]  ;;  %v1575_v31 = vld [vmem:[#allocation2 + $0xd0] sm:$0xf]  ;;  %v1815_v33 = vld [vmem:[#allocation2 + $0xd4] sm:$0xf] }
  0x9d   :  { %774 = vmatmul.bf16.gmra.mxu1 %v1532_v35  ;;  %854 = vmatmul.bf16.gmra.mxu3 %v1660_v56  ;;  %v1841_v56 = vld [vmem:[#allocation2 + $0x1a4] sm:$0xf] }
  0xa9   :  { %v571_v48 = vpop.f32.mrf.mxu0 }
  0xaa   :  { %v740_v49 = vpop.f32.mrf.mxu1 }
  0xab   :  { %v2204_v50 = vadd.f32 %v740_v49, %v571_v48 }
  0xac   :  { %610 = vmatmul.bf16.gmra.mxu0 %v1536_v46  ;;  %690 = vmatmul.bf16.gmra.mxu2 %v1664_v8  ;;  %v1564_v46 = vor.u32 %v1811_v42, %v1561_v43 }
  0xad   :  { %779 = vmatmul.bf16.gmra.mxu1 %v1540_v47  ;;  %859 = vmatmul.bf16.gmra.mxu3 %v1668_v10 }
  0xaf   :  { %v651_v14 = vpop.f32.mrf.mxu2 }
  0xb0   :  { %v820_v15 = vpop.f32.mrf.mxu3 }
  0xb1   :  { %v573_v57 = vpop.f32.mrf.mxu0  ;;  %v2212_v20 = vadd.f32 %v820_v15, %v651_v14 }
  0xb2   :  { %v742_v58 = vpop.f32.mrf.mxu1 }
  0xb3   :  { %v2206_v59 = vadd.f32 %v742_v58, %v573_v57  ;;  %v1680_v57 = vor.u32 %v1842_v55, %v1679_v54  ;;  %v1681_v58 = vld [vmem:[#allocation2 + $0x1a8] sm:$0xf0] }
  0xb4   :  { %v1684_v60 = vor.u32 %v1841_v56, %v1681_v58 }
  0xb7   :  { %v653_v26 = vpop.f32.mrf.mxu2 }
  0xb8   :  { %v822_v27 = vpop.f32.mrf.mxu3 }
  0xb9   :  { %v576_v2 = vpop.f32.mrf.mxu0  ;;  %v2216_v28 = vadd.f32 %v822_v27, %v653_v26 }
  0xba   :  { %v745_v3 = vpop.f32.mrf.mxu1 }
  0xbb   :  { %v2208_v4 = vadd.f32 %v745_v3, %v576_v2  ;;  %3098 = vst [vmem:[#allocation12_spill] sm:$0xff] %v2216_v28  ;;  %v1567_v2 = vld [vmem:[#allocation2 + $0xc0] sm:$0xf]  ;;  %v1814_v3 = vld [vmem:[#allocation2 + $0xc4] sm:$0xf0] }
  0xbc   :  { %615 = vmatmul.bf16.gmra.mxu0 %v1544_v0  ;;  %695 = vmatmul.bf16.gmra.mxu2 %v1672_v32  ;;  %v1568_v8 = vor.u32 %v1814_v3, %v1567_v2  ;;  %v1816_v32 = vld [vmem:[#allocation2 + $0xd4] sm:$0xf0] }
  0xbd   :  { %784 = vmatmul.bf16.gmra.mxu1 %v1548_v1  ;;  %864 = vmatmul.bf16.gmra.mxu3 %v1676_v34  ;;  %v1577_v34 = vld [vmem:[#allocation2 + $0xd8] sm:$0xf0] }
  0xbf   :  { %v656_v38 = vpop.f32.mrf.mxu2 }
  0xc0   :  { %v825_v39 = vpop.f32.mrf.mxu3 }
  0xc1   :  { %v578_v11 = vpop.f32.mrf.mxu0  ;;  %v2220_v44 = vadd.f32 %v825_v39, %v656_v38  ;;  %v1580_v38 = vor.u32 %v1815_v33, %v1577_v34  ;;  %v1819_v33 = vld [vmem:[#allocation2 + $0xf4] sm:$0xf]  ;;  %v1593_v34 = vld [vmem:[#allocation2 + $0xf8] sm:$0xf0] }
  0xc2   :  { %v747_v12 = vpop.f32.mrf.mxu1 }
  0xc3   :  { %v2210_v13 = vadd.f32 %v747_v12, %v578_v11  ;;  %3100 = vst [vmem:[#allocation14_spill] sm:$0xff] %v2220_v44 }
  0xc7   :  { %v658_v51 = vpop.f32.mrf.mxu2 }
  0xc8   :  { %v827_v52 = vpop.f32.mrf.mxu3 }
  0xc9   :  { %v581_v23 = vpop.f32.mrf.mxu0  ;;  %v2224_v53 = vadd.f32 %v827_v52, %v658_v51  ;;  %v1697_v52 = vld [vmem:[#allocation2 + $0x1c8] sm:$0xf0] }
  0xca   :  { %v750_v24 = vpop.f32.mrf.mxu1 }
  0xcb   :  { %v2214_v25 = vadd.f32 %v750_v24, %v581_v23 }
  0xcc   :  { %620 = vmatmul.bf16.gmra.mxu0 %v1552_v21  ;;  %700 = vmatmul.bf16.gmra.mxu2 %v1680_v57  ;;  %v1688_v21 = vor.u32 %v1844_v18, %v1687_v17  ;;  %v1848_v17 = vld [vmem:[#allocation2 + $0x1d4] sm:$0xf0]  ;;  %v1847_v18 = vld [vmem:[#allocation2 + $0x1d4] sm:$0xf] }
  0xcd   :  { %3097 = vst [vmem:[#allocation11_spill] sm:$0xff] %v2214_v25  ;;  %789 = vmatmul.bf16.gmra.mxu1 %v1556_v22  ;;  %869 = vmatmul.bf16.gmra.mxu3 %v1684_v60  ;;  %v1689_v22 = vld [vmem:[#allocation2 + $0x1b8] sm:$0xf0] }
  0xce   :  { %v1692_v23 = vor.u32 %v1843_v19, %v1689_v22 }
  0xcf   :  { %v661_v0 = vpop.f32.mrf.mxu2 }
  0xd0   :  { %v830_v1 = vpop.f32.mrf.mxu3 }
  0xd1   :  { %v583_v35 = vpop.f32.mrf.mxu0  ;;  %v2228_v7 = vadd.f32 %v830_v1, %v661_v0  ;;  %v1817_v0 = vld [vmem:[#allocation2 + $0xe4] sm:$0xf]  ;;  %v1585_v1 = vld [vmem:[#allocation2 + $0xe8] sm:$0xf0] }
  0xd2   :  { %v752_v36 = vpop.f32.mrf.mxu1  ;;  %v1588_v5 = vor.u32 %v1817_v0, %v1585_v1 }
  0xd3   :  { %v2218_v37 = vadd.f32 %v752_v36, %v583_v35  ;;  %v1576_v36 = vor.u32 %v1816_v32, %v1575_v31  ;;  %v1591_v31 = vld [vmem:[#allocation2 + $0xf0] sm:$0xf]  ;;  %v1820_v32 = vld [vmem:[#allocation2 + $0xf4] sm:$0xf0] }
  0xd5   :  { %3099 = vst [vmem:[#allocation13_spill] sm:$0xff] %v2218_v37 }
  0xd7   :  { %v663_v14 = vpop.f32.mrf.mxu2 }
  0xd8   :  { %v832_v15 = vpop.f32.mrf.mxu3 }
  0xd9   :  { %v586_v47 = vpop.f32.mrf.mxu0  ;;  %v2232_v16 = vadd.f32 %v832_v15, %v663_v14  ;;  %v1703_v15 = vld [vmem:[#allocation2 + $0x1d0] sm:$0xf] }
  0xda   :  { %v755_v48 = vpop.f32.mrf.mxu1  ;;  %v1704_v19 = vor.u32 %v1848_v17, %v1703_v15  ;;  %v1719_v17 = vld [vmem:[#allocation2 + $0x1f0] sm:$0xf] }
  0xdb   :  { %v2222_v49 = vadd.f32 %v755_v48, %v586_v47  ;;  %v1846_v47 = vld [vmem:[#allocation2 + $0x1c4] sm:$0xf0]  ;;  %v1845_v48 = vld [vmem:[#allocation2 + $0x1c4] sm:$0xf] }
  0xdc   :  { %625 = vmatmul.bf16.gmra.mxu0 %v1560_v45  ;;  %705 = vmatmul.bf16.gmra.mxu2 %v1688_v21  ;;  %v1700_v54 = vor.u32 %v1845_v48, %v1697_v52  ;;  %v1705_v21 = vld [vmem:[#allocation2 + $0x1d8] sm:$0xf0]  ;;  %v1850_v52 = vld [vmem:[#allocation2 + $0x1e4] sm:$0xf0] }
  0xdd   :  { %3101 = vst [vmem:[#allocation15_spill] sm:$0xff] %v2222_v49  ;;  %794 = vmatmul.bf16.gmra.mxu1 %v1564_v46  ;;  %874 = vmatmul.bf16.gmra.mxu3 %v1692_v23  ;;  %v1695_v46 = vld [vmem:[#allocation2 + $0x1c0] sm:$0xf]  ;;  %v1708_v22 = vor.u32 %v1847_v18, %v1705_v21  ;;  %v1852_v18 = vld [vmem:[#allocation2 + $0x1f4] sm:$0xf0] }
  0xde   :  { %v1696_v51 = vor.u32 %v1846_v47, %v1695_v46  ;;  %v1720_v21 = vor.u32 %v1852_v18, %v1719_v17 }
  0xdf   :  { %v666_v29 = vpop.f32.mrf.mxu2 }
  0xe0   :  { %v835_v30 = vpop.f32.mrf.mxu3 }
  0xe1   :  { %v588_v61 = vpop.f32.mrf.mxu0  ;;  %v2236_v35 = vadd.f32 %v835_v30, %v666_v29 }
  0xe2   :  { %v757_v62 = vpop.f32.mrf.mxu1 }
  0xe3   :  { %v2226_v63 = vadd.f32 %v757_v62, %v588_v61  ;;  %3105 = vst [vmem:[#allocation19_spill] sm:$0xff] %v2236_v35  ;;  %v1583_v61 = vld [vmem:[#allocation2 + $0xe0] sm:$0xf]  ;;  %v1818_v62 = vld [vmem:[#allocation2 + $0xe4] sm:$0xf0] }
  0xe4   :  { %v1584_v3 = vor.u32 %v1818_v62, %v1583_v61 }
  0xe5   :  { %3102 = vst [vmem:[#allocation16_spill] sm:$0xff] %v2226_v63 }
  0xe7   :  { %v668_v42 = vpop.f32.mrf.mxu2 }
  0xe8   :  { %v837_v43 = vpop.f32.mrf.mxu3 }
  0xe9   :  { %v591_v10 = vpop.f32.mrf.mxu0  ;;  %v2240_v45 = vadd.f32 %v837_v43, %v668_v42 }
  0xea   :  { %v760_v11 = vpop.f32.mrf.mxu1 }
  0xeb   :  { %v2230_v12 = vadd.f32 %v760_v11, %v591_v10  ;;  %3107 = vst [vmem:[#allocation21_spill] sm:$0xff] %v2240_v45 }
  0xec   :  { %630 = vmatmul.bf16.gmra.mxu0 %v1568_v8  ;;  %710 = vmatmul.bf16.gmra.mxu2 %v1696_v51  ;;  %v1711_v51 = vld [vmem:[#allocation2 + $0x1e0] sm:$0xf] }
  0xed   :  { %3103 = vst [vmem:[#allocation17_spill] sm:$0xff] %v2230_v12  ;;  %799 = vmatmul.bf16.gmra.mxu1 %v1572_v9  ;;  %879 = vmatmul.bf16.gmra.mxu3 %v1700_v54  ;;  %v1849_v54 = vld [vmem:[#allocation2 + $0x1e4] sm:$0xf] }
  0xef   :  { %v671_v58 = vpop.f32.mrf.mxu2 }
  0xf0   :  { %v840_v60 = vpop.f32.mrf.mxu3 }
  0xf1   :  { %v593_v24 = vpop.f32.mrf.mxu0  ;;  %v2244_v2 = vadd.f32 %v840_v60, %v671_v58 }
  0xf2   :  { %v762_v26 = vpop.f32.mrf.mxu1 }
  0xf3   :  { %v2234_v27 = vadd.f32 %v762_v26, %v593_v24 }
  0xf5   :  { %3104 = vst [vmem:[#allocation18_spill] sm:$0xff] %v2234_v27 }
  0xf7   :  { %v673_v10 = vpop.f32.mrf.mxu2 }
  0xf8   :  { %v842_v11 = vpop.f32.mrf.mxu3 }
  0xf9   :  { %v596_v39 = vpop.f32.mrf.mxu0  ;;  %v2248_v14 = vadd.f32 %v842_v11, %v673_v10 }
  0xfa   :  { %v765_v40 = vpop.f32.mrf.mxu1 }
  0xfb   :  { %v2238_v41 = vadd.f32 %v765_v40, %v596_v39  ;;  %v1596_v39 = vor.u32 %v1819_v33, %v1593_v34 }
  0xfc   :  { %635 = vmatmul.bf16.gmra.mxu0 %v1576_v36  ;;  %715 = vmatmul.bf16.gmra.mxu2 %v1704_v19  ;;  %v1851_v19 = vld [vmem:[#allocation2 + $0x1f4] sm:$0xf] }
  0xfd   :  { %3106 = vst [vmem:[#allocation20_spill] sm:$0xff] %v2238_v41  ;;  %804 = vmatmul.bf16.gmra.mxu1 %v1580_v38  ;;  %884 = vmatmul.bf16.gmra.mxu3 %v1708_v22  ;;  %v1592_v38 = vor.u32 %v1820_v32, %v1591_v31  ;;  %v1721_v22 = vld [vmem:[#allocation2 + $0x1f8] sm:$0xf0] }
  0xff   :  { %v676_v29 = vpop.f32.mrf.mxu2 }
 0x100   :  { %v845_v30 = vpop.f32.mrf.mxu3 }
 0x101   :  { %v598_v55 = vpop.f32.mrf.mxu0  ;;  %v2252_v36 = vadd.f32 %v845_v30, %v676_v29 }
 0x102   :  { %v767_v56 = vpop.f32.mrf.mxu1 }
 0x103   :  { %v2242_v57 = vadd.f32 %v767_v56, %v598_v55  ;;  %v1712_v55 = vor.u32 %v1850_v52, %v1711_v51  ;;  %v1713_v56 = vld [vmem:[#allocation2 + $0x1e8] sm:$0xf0] }
 0x104   :  { %v1716_v58 = vor.u32 %v1849_v54, %v1713_v56 }
 0x105   :  { %3108 = vst [vmem:[#allocation22_spill] sm:$0xff] %v2242_v57 }
 0x107   :  { %v678_v46 = vpop.f32.mrf.mxu2 }
 0x108   :  { %v847_v47 = vpop.f32.mrf.mxu3 }
 0x109   :  { %v601_v6 = vpop.f32.mrf.mxu0  ;;  %v2256_v48 = vadd.f32 %v847_v47, %v678_v46 }
 0x10a   :  { %v770_v8 = vpop.f32.mrf.mxu1 }
 0x10b   :  { %v2246_v9 = vadd.f32 %v770_v8, %v601_v6  ;;  %3112 = vst [vmem:[#allocation26_spill] sm:$0xff] %v2256_v48 }
 0x10c   :  { %640 = vmatmul.bf16.gmra.mxu0 %v1584_v3  ;;  %720 = vmatmul.bf16.gmra.mxu2 %v1712_v55 }
 0x10d   :  { %3109 = vst [vmem:[#allocation23_spill] sm:$0xff] %v2246_v9  ;;  %809 = vmatmul.bf16.gmra.mxu1 %v1588_v5  ;;  %889 = vmatmul.bf16.gmra.mxu3 %v1716_v58 }
 0x10f   :  { %v681_v0 = vpop.f32.mrf.mxu2 }
 0x110   :  { %v850_v1 = vpop.f32.mrf.mxu3 }
 0x111   :  { %v603_v23 = vpop.f32.mrf.mxu0  ;;  %v2260_v3 = vadd.f32 %v850_v1, %v681_v0 }
 0x112   :  { %v772_v24 = vpop.f32.mrf.mxu1 }
 0x113   :  { %v2250_v26 = vadd.f32 %v772_v24, %v603_v23  ;;  %3113 = vst [vmem:[#allocation27_spill] sm:$0xff] %v2260_v3  ;;  %v1724_v23 = vor.u32 %v1851_v19, %v1721_v22 }
 0x115   :  { %3110 = vst [vmem:[#allocation24_spill] sm:$0xff] %v2250_v26 }
 0x117   :  { %v683_v10 = vpop.f32.mrf.mxu2 }
 0x118   :  { %v852_v11 = vpop.f32.mrf.mxu3 }
 0x119   :  { %v606_v40 = vpop.f32.mrf.mxu0  ;;  %v2264_v15 = vadd.f32 %v852_v11, %v683_v10 }
 0x11a   :  { %v775_v42 = vpop.f32.mrf.mxu1 }
 0x11b   :  { %v2254_v43 = vadd.f32 %v775_v42, %v606_v40 }
 0x11c   :  { %645 = vmatmul.bf16.gmra.mxu0 %v1592_v38  ;;  %725 = vmatmul.bf16.gmra.mxu2 %v1720_v21 }
 0x11d   :  { %3111 = vst [vmem:[#allocation25_spill] sm:$0xff] %v2254_v43  ;;  %814 = vmatmul.bf16.gmra.mxu1 %v1596_v39  ;;  %894 = vmatmul.bf16.gmra.mxu3 %v1724_v23 }
 0x11f   :  { %v686_v31 = vpop.f32.mrf.mxu2 }
 0x120   :  { %v855_v32 = vpop.f32.mrf.mxu3 }
 0x121   :  { %v608_v60 = vpop.f32.mrf.mxu0  ;;  %v2268_v33 = vadd.f32 %v855_v32, %v686_v31 }
 0x122   :  { %v777_v61 = vpop.f32.mrf.mxu1 }
 0x123   :  { %v2258_v62 = vadd.f32 %v777_v61, %v608_v60 }
 0x127   :  { %v688_v40 = vpop.f32.mrf.mxu2 }
 0x128   :  { %v857_v42 = vpop.f32.mrf.mxu3 }
 0x129   :  { %v611_v5 = vpop.f32.mrf.mxu0  ;;  %v2272_v46 = vadd.f32 %v857_v42, %v688_v40  ;;  %v969_v42 = vmul.f32 %v2204_v50, %v2204_v50 }
 0x12a   :  { %v780_v6 = vpop.f32.mrf.mxu1 }
 0x12b   :  { %v2262_v8 = vadd.f32 %v780_v6, %v611_v5 }
 0x12f   :  { %v691_v54 = vpop.f32.mrf.mxu2 }
 0x130   :  { %v860_v55 = vpop.f32.mrf.mxu3 }
 0x131   :  { %v613_v24 = vpop.f32.mrf.mxu0  ;;  %v2276_v56 = vadd.f32 %v860_v55, %v691_v54 }
 0x132   :  { %v782_v29 = vpop.f32.mrf.mxu1 }
 0x133   :  { %v2266_v30 = vadd.f32 %v782_v29, %v613_v24 }
 0x137   :  { %v693_v0 = vpop.f32.mrf.mxu2 }
 0x138   :  { %v862_v1 = vpop.f32.mrf.mxu3 }
 0x139   :  { %v616_v34 = vpop.f32.mrf.mxu0  ;;  %v2280_v5 = vadd.f32 %v862_v1, %v693_v0  ;;  %v972_v0 = vmul.f32 %v2210_v13, %v2210_v13 }
 0x13a   :  { %v785_v38 = vpop.f32.mrf.mxu1 }
 0x13b   :  { %v2270_v39 = vadd.f32 %v785_v38, %v616_v34  ;;  %v970_v38 = vmul.f32 %v2206_v59, %v2206_v59 }
 0x13f   :  { %v696_v11 = vpop.f32.mrf.mxu2 }
 0x140   :  { %v865_v17 = vpop.f32.mrf.mxu3 }
 0x141   :  { %v618_v47 = vpop.f32.mrf.mxu0  ;;  %v2286_v18 = vadd.f32 %v865_v17, %v696_v11  ;;  %v973_v17 = vmul.f32 %v2214_v25, %v2214_v25 }
 0x142   :  { %v787_v51 = vpop.f32.mrf.mxu1 }
 0x143   :  { %v2274_v52 = vadd.f32 %v787_v51, %v618_v47  ;;  %v900_v47 = vadd.f32 %v2206_v59, %v2204_v50  ;;  %v971_v51 = vmul.f32 %v2208_v4, %v2208_v4 }
 0x147   :  { %v698_v22 = vpop.f32.mrf.mxu2 }
 0x148   :  { %v867_v23 = vpop.f32.mrf.mxu3 }
 0x149   :  { %v621_v58 = vpop.f32.mrf.mxu0  ;;  %v2292_v24 = vadd.f32 %v867_v23, %v698_v22 }
 0x14a   :  { %v790_v60 = vpop.f32.mrf.mxu1 }
 0x14b   :  { %v2278_v61 = vadd.f32 %v790_v60, %v621_v58  ;;  %v1033_v58 = vadd.f32 %v970_v38, %v969_v42  ;;  %v901_v60 = vadd.f32 %v900_v47, %v2208_v4  ;;  %v975_v42 = vmul.f32 %v2222_v49, %v2222_v49 }
 0x14d   :  { %3114 = vst [vmem:[#allocation28_spill] sm:$0xff] %v2278_v61  ;;  %v1034_v1 = vadd.f32 %v1033_v58, %v971_v51  ;;  %v902_v11 = vadd.f32 %v901_v60, %v2210_v13 }
 0x14f   :  { %v701_v32 = vpop.f32.mrf.mxu2  ;;  %v1035_v22 = vadd.f32 %v1034_v1, %v972_v0  ;;  %v903_v23 = vadd.f32 %v902_v11, %v2214_v25  ;;  %v976_v0 = vmul.f32 %v2226_v63, %v2226_v63 }
 0x150   :  { %v870_v34 = vpop.f32.mrf.mxu3 }
 0x151   :  { %v2282_v6 = vpop.f32.mrf.mxu0  ;;  %v2300_v40 = vadd.f32 %v870_v34, %v701_v32  ;;  %v974_v32 = vmul.f32 %v2218_v37, %v2218_v37  ;;  %v1036_v34 = vadd.f32 %v1035_v22, %v973_v17  ;;  %v904_v38 = vadd.f32 %v903_v23, %v2218_v37 }
 0x152   :  { %v2284_v10 = vpop.f32.mrf.mxu1  ;;  %v977_v17 = vmul.f32 %v2230_v12, %v2230_v12  ;;  %v978_v37 = vmul.f32 %v2234_v27, %v2234_v27 }
 0x153   :  { %v1037_v58 = vadd.f32 %v1036_v34, %v974_v32  ;;  %v905_v60 = vadd.f32 %v904_v38, %v2222_v49  ;;  %v979_v34 = vmul.f32 %v2238_v41, %v2238_v41 }
 0x155   :  { %v1038_v1 = vadd.f32 %v1037_v58, %v975_v42  ;;  %v906_v11 = vadd.f32 %v905_v60, %v2226_v63 }
 0x157   :  { %v1039_v22 = vadd.f32 %v1038_v1, %v976_v0  ;;  %v907_v23 = vadd.f32 %v906_v11, %v2230_v12  ;;  %v2340_v38 = vpop.f32.mrf.mxu2  ;;  %v980_v1 = vmul.f32 %v2242_v57, %v2242_v57  ;;  %v982_v12 = vmul.f32 %v2250_v26, %v2250_v26 }
 0x158   :  { %v2342_v42 = vpop.f32.mrf.mxu3 }
 0x159   :  { %v2288_v19 = vpop.f32.mrf.mxu0  ;;  %v1040_v25 = vadd.f32 %v1039_v22, %v977_v17  ;;  %v908_v32 = vadd.f32 %v907_v23, %v2234_v27  ;;  %v981_v22 = vmul.f32 %v2246_v9, %v2246_v9 }
 0x15a   :  { %v2290_v21 = vpop.f32.mrf.mxu1 }
 0x15b   :  { %v1041_v63 = vadd.f32 %v1040_v25, %v978_v37  ;;  %v909_v0 = vadd.f32 %v908_v32, %v2238_v41  ;;  %v983_v37 = vmul.f32 %v2254_v43, %v2254_v43 }
 0x15d   :  { %v1042_v11 = vadd.f32 %v1041_v63, %v979_v34  ;;  %v910_v17 = vadd.f32 %v909_v0, %v2242_v57  ;;  %v984_v0 = vmul.f32 %v2258_v62, %v2258_v62 }
 0x15f   :  { %v1043_v23 = vadd.f32 %v1042_v11, %v980_v1  ;;  %v911_v27 = vadd.f32 %v910_v17, %v2246_v9  ;;  %v2359_v1 = vpop.f32.mrf.mxu2 }
 0x160   :  { %v2361_v11 = vpop.f32.mrf.mxu3 }
 0x161   :  { %v2294_v29 = vpop.f32.mrf.mxu0  ;;  %v1044_v49 = vadd.f32 %v1043_v23, %v981_v22  ;;  %v912_v25 = vadd.f32 %v911_v27, %v2250_v26  ;;  %v985_v27 = vmul.f32 %v2262_v8, %v2262_v8 }
 0x162   :  { %v2296_v31 = vpop.f32.mrf.mxu1 }
 0x163   :  { %v1045_v63 = vadd.f32 %v1044_v49, %v982_v12  ;;  %v913_v34 = vadd.f32 %v912_v25, %v2254_v43  ;;  %v986_v49 = vmul.f32 %v2266_v30, %v2266_v30  ;;  %v987_v43 = vmul.f32 %v2270_v39, %v2270_v39 }
 0x165   :  { %v1046_v17 = vadd.f32 %v1045_v63, %v983_v37  ;;  %v914_v22 = vadd.f32 %v913_v34, %v2258_v62  ;;  %v988_v34 = vmul.f32 %v2274_v52, %v2274_v52 }
 0x167   :  { %v1047_v23 = vadd.f32 %v1046_v17, %v984_v0  ;;  %v915_v26 = vadd.f32 %v914_v22, %v2262_v8  ;;  %v2377_v0 = vadd.f32 %v2284_v10, %v2282_v6 }
 0x169   :  { %v2308_v54 = vpop.f32.mrf.mxu0  ;;  %v1048_v12 = vadd.f32 %v1047_v23, %v985_v27  ;;  %v916_v25 = vadd.f32 %v915_v26, %v2266_v30  ;;  %v989_v26 = vmul.f32 %v2278_v61, %v2278_v61  ;;  %v2384_v27 = vadd.f32 %v2290_v21, %v2288_v19  ;;  %v2386_v23 = vpop.f32.mrf.mxu2 }
 0x16a   :  { %v2310_v55 = vpop.f32.mrf.mxu1  ;;  %v990_v6 = vmul.f32 %v2377_v0, %v2377_v0 }
 0x16b   :  { %v1049_v37 = vadd.f32 %v1048_v12, %v986_v49  ;;  %v917_v63 = vadd.f32 %v916_v25, %v2270_v39  ;;  %v2388_v49 = vpop.f32.mrf.mxu3  ;;  %v991_v19 = vmul.f32 %v2384_v27, %v2384_v27  ;;  %v2402_v21 = vadd.f32 %v2310_v55, %v2308_v54 }
 0x16d   :  { %v1050_v17 = vadd.f32 %v1049_v37, %v987_v43  ;;  %v918_v22 = vadd.f32 %v917_v63, %v2274_v52  ;;  %v2395_v43 = vadd.f32 %v2296_v31, %v2294_v29 }
 0x16f   :  { %v1051_v12 = vadd.f32 %v1050_v17, %v988_v34  ;;  %v919_v25 = vadd.f32 %v918_v22, %v2278_v61  ;;  %v992_v61 = vmul.f32 %v2395_v43, %v2395_v43 }
 0x171   :  { %v2324_v47 = vpop.f32.mrf.mxu0  ;;  %v1052_v10 = vadd.f32 %v1051_v12, %v989_v26  ;;  %v920_v37 = vadd.f32 %v919_v25, %v2377_v0  ;;  %v993_v12 = vmul.f32 %v2402_v21, %v2402_v21 }
 0x172   :  { %v2326_v51 = vpop.f32.mrf.mxu1 }
 0x173   :  { %v1053_v17 = vadd.f32 %v1052_v10, %v990_v6  ;;  %v921_v22 = vadd.f32 %v920_v37, %v2384_v27  ;;  %v2409_v29 = vadd.f32 %v2326_v51, %v2324_v47  ;;  %v2421_v37 = vpop.f32.mrf.mxu2  ;;  %v2423_v47 = vpop.f32.mrf.mxu3 }
 0x175   :  { %v1054_v31 = vadd.f32 %v1053_v17, %v991_v19  ;;  %v922_v26 = vadd.f32 %v921_v22, %v2395_v43  ;;  %v994_v6 = vmul.f32 %v2409_v29, %v2409_v29 }
 0x177   :  { %v1055_v55 = vadd.f32 %v1054_v31, %v992_v61  ;;  %v923_v25 = vadd.f32 %v922_v26, %v2402_v21 }
 0x179   :  { %v636_v58 = vpop.f32.mrf.mxu0  ;;  %v1056_v51 = vadd.f32 %v1055_v55, %v993_v12  ;;  %v924_v19 = vadd.f32 %v923_v25, %v2409_v29 }
 0x17a   :  { %v805_v60 = vpop.f32.mrf.mxu1 }
 0x17b   :  { %v2414_v54 = vadd.f32 %v805_v60, %v636_v58  ;;  %v1057_v22 = vadd.f32 %v1056_v51, %v994_v6 }
 0x17d   :  { %v995_v17 = vmul.f32 %v2414_v54, %v2414_v54  ;;  %v925_v31 = vadd.f32 %v924_v19, %v2414_v54 }
 0x17f   :  { %v1058_v26 = vadd.f32 %v1057_v22, %v995_v17  ;;  %v2448_v17 = vpop.f32.mrf.mxu3 }
 0x181   :  { %v638_v32 = vpop.f32.mrf.mxu0 }
 0x182   :  { %v807_v41 = vpop.f32.mrf.mxu1 }
 0x183   :  { %v2419_v10 = vadd.f32 %v807_v41, %v638_v32 }
 0x185   :  { %v996_v41 = vmul.f32 %v2419_v10, %v2419_v10  ;;  %v926_v12 = vadd.f32 %v925_v31, %v2419_v10 }
 0x189   :  { %v641_v9 = vpop.f32.mrf.mxu0 }
 0x18a   :  { %v810_v57 = vpop.f32.mrf.mxu1 }
 0x18b   :  { %v2428_v58 = vadd.f32 %v810_v57, %v641_v9  ;;  %v1059_v57 = vadd.f32 %v1058_v26, %v996_v41 }
 0x18d   :  { %3115 = vst [vmem:[#allocation29_spill] sm:$0xff] %v2428_v58  ;;  %v997_v55 = vmul.f32 %v2428_v58, %v2428_v58  ;;  %v927_v9 = vadd.f32 %v926_v12, %v2428_v58  ;;  %v1002_v58 = vmul.f32 %v2216_v28, %v2216_v28 }
 0x18f   :  { %v1060_v51 = vadd.f32 %v1059_v57, %v997_v55  ;;  %v1001_v57 = vmul.f32 %v2212_v20, %v2212_v20 }
 0x191   :  { %v643_v63 = vpop.f32.mrf.mxu0 }
 0x192   :  { %v812_v34 = vpop.f32.mrf.mxu1 }
 0x193   :  { %v2433_v32 = vadd.f32 %v812_v34, %v643_v63  ;;  %v2446_v34 = vpop.f32.mrf.mxu2 }
 0x195   :  { %3116 = vst [vmem:[#allocation30_spill] sm:$0xff] %v2433_v32  ;;  %v998_v6 = vmul.f32 %v2433_v32, %v2433_v32  ;;  %v928_v19 = vadd.f32 %v927_v9, %v2433_v32 }
 0x199   :  { %v646_v61 = vpop.f32.mrf.mxu0 }
 0x19a   :  { %v815_v60 = vpop.f32.mrf.mxu1 }
 0x19b   :  { %v2438_v25 = vadd.f32 %v815_v60, %v646_v61  ;;  %v1061_v61 = vadd.f32 %v1060_v51, %v998_v6 }
 0x19d   :  { %v999_v63 = vmul.f32 %v2438_v25, %v2438_v25  ;;  %v929_v60 = vadd.f32 %v928_v19, %v2438_v25  ;;  %v1003_v19 = vmul.f32 %v2220_v44, %v2220_v44 }
 0x19f   :  { %v1062_v26 = vadd.f32 %v1061_v61, %v999_v63  ;;  %v2467_v61 = vpop.f32.mrf.mxu3 }
 0x1a1   :  { %v648_v22 = vpop.f32.mrf.mxu0 }
 0x1a2   :  { %v817_v31 = vpop.f32.mrf.mxu1 }
 0x1a3   :  { %v2451_v41 = vadd.f32 %v817_v31, %v648_v22  ;;  %v2465_v31 = vpop.f32.mrf.mxu2 }
 0x1a5   :  { %v930_v12 = vadd.f32 %v929_v60, %v2451_v41  ;;  %v1000_v55 = vmul.f32 %v2451_v41, %v2451_v41  ;;  %v1004_v60 = vmul.f32 %v2224_v53, %v2224_v53 }
 0x1a7   :  { %v931_v9 = vadd.f32 %v930_v12, %v2212_v20  ;;  %v1063_v32 = vadd.f32 %v1062_v26, %v1000_v55  ;;  %v1005_v55 = vmul.f32 %v2228_v7, %v2228_v7 }
 0x1a9   :  { %v932_v6 = vadd.f32 %v931_v9, %v2216_v28  ;;  %v1064_v51 = vadd.f32 %v1063_v32, %v1001_v57  ;;  %v1006_v9 = vmul.f32 %v2232_v16, %v2232_v16 }
 0x1ab   :  { %v933_v63 = vadd.f32 %v932_v6, %v2220_v44  ;;  %v1065_v22 = vadd.f32 %v1064_v51, %v1002_v58  ;;  %v1007_v51 = vmul.f32 %v2236_v35, %v2236_v35 }
 0x1ad   :  { %v934_v26 = vadd.f32 %v933_v63, %v2224_v53  ;;  %v1066_v12 = vadd.f32 %v1065_v22, %v1003_v19  ;;  %v1008_v19 = vmul.f32 %v2240_v45, %v2240_v45 }
 0x1af   :  { %v935_v32 = vadd.f32 %v934_v26, %v2228_v7  ;;  %v1067_v57 = vadd.f32 %v1066_v12, %v1004_v60  ;;  %v2484_v26 = vpop.f32.mrf.mxu2  ;;  %v2486_v60 = vpop.f32.mrf.mxu3  ;;  %v1009_v12 = vmul.f32 %v2244_v2, %v2244_v2 }
 0x1b1   :  { %v936_v58 = vadd.f32 %v935_v32, %v2232_v16  ;;  %v1068_v6 = vadd.f32 %v1067_v57, %v1005_v55  ;;  %v1010_v57 = vmul.f32 %v2248_v14, %v2248_v14 }
 0x1b3   :  { %v937_v44 = vadd.f32 %v936_v58, %v2236_v35  ;;  %v1069_v28 = vadd.f32 %v1068_v6, %v1006_v9 }
 0x1b5   :  { %v938_v63 = vadd.f32 %v937_v44, %v2240_v45  ;;  %v1070_v22 = vadd.f32 %v1069_v28, %v1007_v51  ;;  %v1011_v44 = vmul.f32 %v2252_v36, %v2252_v36  ;;  %v1012_v51 = vmul.f32 %v2256_v48, %v2256_v48 }
 0x1b7   :  { %v939_v55 = vadd.f32 %v938_v63, %v2244_v2  ;;  %v1071_v32 = vadd.f32 %v1070_v22, %v1008_v19  ;;  %v1013_v19 = vmul.f32 %v2260_v3, %v2260_v3 }
 0x1b9   :  { %v940_v9 = vadd.f32 %v939_v55, %v2248_v14  ;;  %v1072_v58 = vadd.f32 %v1071_v32, %v1009_v12  ;;  %v721_v55 = vpop.f32.mrf.mxu2  ;;  %v890_v12 = vpop.f32.mrf.mxu3  ;;  %v1014_v32 = vmul.f32 %v2264_v15, %v2264_v15 }
 0x1bb   :  { %v941_v28 = vadd.f32 %v940_v9, %v2252_v36  ;;  %v1073_v6 = vadd.f32 %v1072_v58, %v1010_v57  ;;  %v1015_v58 = vmul.f32 %v2268_v33, %v2268_v33 }
 0x1bd   :  { %v942_v45 = vadd.f32 %v941_v28, %v2256_v48  ;;  %v1074_v35 = vadd.f32 %v1073_v6, %v1011_v44  ;;  %v1016_v6 = vmul.f32 %v2272_v46, %v2272_v46 }
 0x1bf   :  { %v1075_v63 = vadd.f32 %v1074_v35, %v1012_v51  ;;  %v943_v22 = vadd.f32 %v942_v45, %v2260_v3  ;;  %v1017_v51 = vmul.f32 %v2276_v56, %v2276_v56 }
 0x1c1   :  { %v944_v9 = vadd.f32 %v943_v22, %v2264_v15  ;;  %v1076_v57 = vadd.f32 %v1075_v63, %v1013_v19  ;;  %v1018_v19 = vmul.f32 %v2280_v5, %v2280_v5 }
 0x1c3   :  { %v945_v28 = vadd.f32 %v944_v9, %v2268_v33  ;;  %v1077_v44 = vadd.f32 %v1076_v57, %v1014_v32  ;;  %v723_v9 = vpop.f32.mrf.mxu2  ;;  %v892_v32 = vpop.f32.mrf.mxu3  ;;  %v1019_v57 = vmul.f32 %v2286_v18, %v2286_v18 }
 0x1c5   :  { %v946_v35 = vadd.f32 %v945_v28, %v2272_v46  ;;  %v1078_v45 = vadd.f32 %v1077_v44, %v1015_v58  ;;  %v1020_v44 = vmul.f32 %v2292_v24, %v2292_v24 }
 0x1c7   :  { %v947_v3 = vadd.f32 %v946_v35, %v2276_v56  ;;  %v1079_v48 = vadd.f32 %v1078_v45, %v1016_v6  ;;  %v2525_v6 = vadd.f32 %v2342_v42, %v2340_v38  ;;  %v2539_v38 = vadd.f32 %v2388_v49, %v2386_v23 }
 0x1c9   :  { %v948_v63 = vadd.f32 %v947_v3, %v2280_v5  ;;  %v1080_v22 = vadd.f32 %v1079_v48, %v1017_v51  ;;  %v1021_v48 = vmul.f32 %v2300_v40, %v2300_v40  ;;  %v2532_v3 = vadd.f32 %v2361_v11, %v2359_v1 }
 0x1ca   :  { %v2546_v1 = vadd.f32 %v2423_v47, %v2421_v37 }
 0x1cb   :  { %v949_v28 = vadd.f32 %v948_v63, %v2286_v18  ;;  %v1081_v58 = vadd.f32 %v1080_v22, %v1018_v19  ;;  %v1022_v63 = vmul.f32 %v2525_v6, %v2525_v6 }
 0x1cc   :  { %v1025_v37 = vmul.f32 %v2546_v1, %v2546_v1 }
 0x1cd   :  { %v950_v35 = vadd.f32 %v949_v28, %v2292_v24  ;;  %v1082_v45 = vadd.f32 %v1081_v58, %v1019_v57  ;;  %v1023_v57 = vmul.f32 %v2532_v3, %v2532_v3  ;;  %v726_v58 = vpop.f32.mrf.mxu2 }
 0x1cf   :  { %v951_v51 = vadd.f32 %v950_v35, %v2300_v40  ;;  %v1083_v19 = vadd.f32 %v1082_v45, %v1020_v44  ;;  %v895_v44 = vpop.f32.mrf.mxu3  ;;  %v1024_v35 = vmul.f32 %v2539_v38, %v2539_v38  ;;  %v2554_v45 = vadd.f32 %v2448_v17, %v2446_v34 }
 0x1d0   :  { %v2568_v34 = vadd.f32 %v2486_v60, %v2484_v26 }
 0x1d1   :  { %v952_v42 = vadd.f32 %v951_v51, %v2525_v6  ;;  %v1084_v22 = vadd.f32 %v1083_v19, %v1021_v48  ;;  %v2561_v51 = vadd.f32 %v2467_v61, %v2465_v31 }
 0x1d2   :  { %3118 = vst [vmem:[#allocation32_spill] sm:$0xff] %v2568_v34 }
 0x1d3   :  { %v953_v11 = vadd.f32 %v952_v42, %v2532_v3  ;;  %v1085_v28 = vadd.f32 %v1084_v22, %v1022_v63  ;;  %3117 = vst [vmem:[#allocation31_spill] sm:$0xff] %v2561_v51  ;;  %v1026_v42 = vmul.f32 %v2554_v45, %v2554_v45 }
 0x1d5   :  { %v954_v23 = vadd.f32 %v953_v11, %v2539_v38  ;;  %v1086_v49 = vadd.f32 %v1085_v28, %v1023_v57  ;;  %v1027_v57 = vmul.f32 %v2561_v51, %v2561_v51  ;;  %v2573_v11 = vadd.f32 %v890_v12, %v721_v55 }
 0x1d6   :  { %v1028_v28 = vmul.f32 %v2568_v34, %v2568_v34 }
 0x1d7   :  { %v955_v48 = vadd.f32 %v954_v23, %v2546_v1  ;;  %v1087_v47 = vadd.f32 %v1086_v49, %v1024_v35  ;;  %3119 = vst [vmem:[#allocation33_spill] sm:$0xff] %v2573_v11  ;;  %v2578_v35 = vadd.f32 %v892_v32, %v723_v9  ;;  %v728_v23 = vpop.f32.mrf.mxu2  ;;  %v897_v49 = vpop.f32.mrf.mxu3 }
 0x1d9   :  { %v1088_v19 = vadd.f32 %v1087_v47, %v1025_v37  ;;  %v956_v63 = vadd.f32 %v955_v48, %v2554_v45  ;;  %3120 = vst [vmem:[#allocation34_spill] sm:$0xff] %v2578_v35  ;;  %v1029_v48 = vmul.f32 %v2573_v11, %v2573_v11  ;;  %v896_v37 = vadd.f32 %v895_v44, %v726_v58 }
 0x1da   :  { %v1030_v12 = vmul.f32 %v2578_v35, %v2578_v35 }
 0x1db   :  { %v1089_v17 = vadd.f32 %v1088_v19, %v1026_v42  ;;  %v957_v22 = vadd.f32 %v956_v63, %v2561_v51  ;;  %v898_v19 = vadd.f32 %v897_v49, %v728_v23  ;;  %v1031_v9 = vmul.f32 %v896_v37, %v896_v37 }
 0x1dd   :  { %v1090_v31 = vadd.f32 %v1089_v17, %v1027_v57  ;;  %v958_v61 = vadd.f32 %v957_v22, %v2568_v34  ;;  %v1032_v22 = vmul.f32 %v898_v19, %v898_v19 }
 0x1df   :  { %v1091_v26 = vadd.f32 %v1090_v31, %v1028_v28  ;;  %v959_v60 = vadd.f32 %v958_v61, %v2573_v11 }
 0x1e1   :  { %v1092_v47 = vadd.f32 %v1091_v26, %v1029_v48  ;;  %v960_v55 = vadd.f32 %v959_v60, %v2578_v35 }
 0x1e3   :  { %v1093_v63 = vadd.f32 %v1092_v47, %v1030_v12  ;;  %v961_v42 = vadd.f32 %v960_v55, %v896_v37 }
 0x1e5   :  { %v1094_v32 = vadd.f32 %v1093_v63, %v1031_v9  ;;  %v962_v17 = vadd.f32 %v961_v42, %v898_v19 }
 0x1e7   :  { %v963_v57 = vrot.slane %v962_v17, 4  ;;  %v1095_v31 = vadd.f32 %v1094_v32, %v1032_v22 }
 0x1e9   :  { %v964_v61 = vadd.f32 %v963_v57, %v962_v17  ;;  %v1096_v28 = vrot.slane %v1095_v31, 4  ;;  %v1120_v57 = vld [vmem:[%s3071_s3] sm:$0x1] }
 0x1eb   :  { %v965_v34 = vrot.slane %v964_v61, 2  ;;  %v1097_v11 = vadd.f32 %v1096_v28, %v1095_v31 }
 0x1ed   :  { %v966_v58 = vadd.f32 %v965_v34, %v964_v61  ;;  %v1098_v44 = vrot.slane %v1097_v11, 2  ;;  %v1107_v34 = vld [vmem:[%s3070_s2] sm:$0x1]  ;;  %s2169_s2 = smov [#allocation7]  }
 0x1ee   :  { %s1453_s3 = sshll.u32 %s2169_s2, 4  ;;  %s1454_s3 = int_to_ptr.vmem [resolvable:$true] %s1453_s3 }
 0x1ef   :  { %v967_v26 = vrot.slane %v966_v58, 1  ;;  %v1099_v60 = vadd.f32 %v1098_v44, %v1097_v11 }
 0x1f1   :  { %v968_v48 = vadd.f32 %v967_v26, %v966_v58  ;;  %v1100_v51 = vrot.slane %v1099_v60, 1 }
 0x1f3   :  { %v1101_v35 = vadd.f32 %v1100_v51, %v1099_v60  ;;  %v1102_v23 = vmul.f32 0.001953125, %v968_v48 }
 0x1f5   :  { %v1103_v49 = vmul.f32 0.001953125, %v1101_v35  ;;  %v1104_v47 = vmul.f32 %v1102_v23, %v1102_v23 }
 0x1f7   :  { %v1105_v55 = vsub.f32 %v1103_v49, %v1104_v47 }
 0x1f9   :  { %v1106_v12 = vmax.f32 %v1105_v55, 0.0 }
 0x1fb   :  { %v1108_v63 = vadd.f32 1e-05, %v1106_v12 }
 0x1fd   :  { %2083 = vrsqrt.f32 %v1108_v63  ;;  %vm1115_vm1 = vweird.f32 %v1108_v63 }
 0x203   :  { %v2084_v42 = vpop.eup %2083 }
 0x204   :  { %v1110_v9 = vmul.f32 %v2084_v42, %v1108_v63  ;;  %vm1116_vm0 = vweird.f32 %v2084_v42  ;;  %v3121_v63 = vld [vmem:[#allocation11_spill] sm:$0xff] }
 0x205   :  { %vm1117_vm2 = vmor %vm1115_vm1, %vm1116_vm0 }
 0x206   :  { %v1111_v32 = vmul.f32 %v2084_v42, %v1110_v9  ;;  %v3122_v9 = vld [vmem:[#allocation13_spill] sm:$0xff] }
 0x208   :  { %v1112_v17 = vmul.f32 0.5, %v1111_v32 }
 0x20a   :  { %v1113_v22 = vsub.f32 1.5, %v1112_v17  ;;  %v3123_v17 = vld [vmem:[#allocation15_spill] sm:$0xff] }
 0x20c   :  { %v1114_v11 = vmul.f32 %v2084_v42, %v1113_v22 }
 0x20e   :  { %v1118_v51 = vsel %vm1117_vm2, %v2084_v42, %v1114_v11  ;;  %v3125_v11 = vld [vmem:[#allocation17_spill] sm:$0xff] }
 0x20f   :  { %v1119_v35 = vmul.f32 %v1118_v51, %v1107_v34  ;;  %v3124_v34 = vld [vmem:[#allocation16_spill] sm:$0xff]  ;;  %v3126_v51 = vld [vmem:[#allocation18_spill] sm:$0xff] }
 0x211   :  { %v1121_v31 = vmul.f32 %v1119_v35, %v1102_v23  ;;  %v2592_v61 = vperm.slane %v1119_v35, 0  ;;  %v3127_v35 = vld [vmem:[#allocation20_spill] sm:$0xff] }
 0x213   :  { %v1122_v28 = vsub.f32 %v1120_v57, %v1121_v31  ;;  %v1188_v58 = vmul.f32 %v2592_v61, %v896_v37  ;;  %v1189_v44 = vmul.f32 %v2592_v61, %v898_v19  ;;  %v1126_v23 = vmul.f32 %v2592_v61, %v2204_v50  ;;  %v3128_v57 = vld [vmem:[#allocation22_spill] sm:$0xff] }
 0x214   :  { %v1127_v12 = vmul.f32 %v2592_v61, %v2206_v59  ;;  %v1128_v37 = vmul.f32 %v2592_v61, %v2208_v4  ;;  %v1129_v19 = vmul.f32 %v2592_v61, %v2210_v13  ;;  %v1130_v42 = vmul.f32 %v2592_v61, %v3121_v63 }
 0x215   :  { %v2596_v26 = vperm.slane %v1122_v28, 0  ;;  %v1131_v32 = vmul.f32 %v2592_v61, %v3122_v9  ;;  %v1132_v22 = vmul.f32 %v2592_v61, %v3123_v17  ;;  %v1133_v50 = vmul.f32 %v2592_v61, %v3124_v34  ;;  %v3129_v28 = vld [vmem:[#allocation23_spill] sm:$0xff]  ;;  %v3132_v34 = vld [vmem:[#allocation28_spill] sm:$0xff] }
 0x216   :  { %v1134_v59 = vmul.f32 %v2592_v61, %v3125_v11  ;;  %v1135_v4 = vmul.f32 %v2592_v61, %v3126_v51  ;;  %v1136_v13 = vmul.f32 %v2592_v61, %v3127_v35  ;;  %v1137_v31 = vmul.f32 %v2592_v61, %v3128_v57  ;;  %v3133_v51 = vld [vmem:[#allocation29_spill] sm:$0xff]  ;;  %v3134_v35 = vld [vmem:[#allocation30_spill] sm:$0xff]  ;;  %v3135_v57 = vld [vmem:[#allocation12_spill] sm:$0xff] }
 0x217   :  { %v1255_v60 = vadd.f32 %v2596_v26, %v1188_v58  ;;  %v1256_v48 = vadd.f32 %v2596_v26, %v1189_v44  ;;  %v2626_v58 = vmul.f32 %v2592_v61, %v3129_v28  ;;  %v3130_v44 = vld [vmem:[#allocation24_spill] sm:$0xff]  ;;  %v2646_v63 = vmul.f32 %v2592_v61, %v2266_v30 }
 0x218   :  { %v2650_v9 = vmul.f32 %v2592_v61, %v2270_v39  ;;  %v2654_v17 = vmul.f32 %v2592_v61, %v2274_v52  ;;  %v2666_v30 = vmul.f32 %v2592_v61, %v2384_v27  ;;  %v2670_v39 = vmul.f32 %v2592_v61, %v2395_v43 }
 0x219   :  { %v1319_v49 = vmax.f32 %v1255_v60, 0.0  ;;  %v1320_v47 = vmax.f32 %v1256_v48, 0.0  ;;  %v2630_v60 = vmul.f32 %v2592_v61, %v3130_v44  ;;  %v3131_v48 = vld [vmem:[#allocation25_spill] sm:$0xff]  ;;  %v2674_v52 = vmul.f32 %v2592_v61, %v2402_v21  ;;  %v3136_v44 = vld [vmem:[#allocation14_spill] sm:$0xff] }
 0x21a   :  { %v2678_v11 = vmul.f32 %v2592_v61, %v2409_v29  ;;  %v2686_v27 = vmul.f32 %v2592_v61, %v2419_v10  ;;  %v2690_v43 = vmul.f32 %v2592_v61, %v3133_v51  ;;  %v2694_v21 = vmul.f32 %v2592_v61, %v3134_v35  ;;  %v3139_v35 = vld [vmem:[#allocation21_spill] sm:$0xff] }
 0x21b   :  { %v2027_v55 = vpack.c.bf16 %v1320_v47, %v1319_v49  ;;  %v2634_v49 = vmul.f32 %v2592_v61, %v3131_v48  ;;  %v2638_v47 = vmul.f32 %v2592_v61, %v2258_v62  ;;  %v2658_v62 = vmul.f32 %v2592_v61, %v3132_v34  ;;  %v3137_v34 = vld [vmem:[#allocation19_spill] sm:$0xff] }
 0x21c   :  { %v2698_v29 = vmul.f32 %v2592_v61, %v2438_v25  ;;  %v2706_v10 = vmul.f32 %v2592_v61, %v2212_v20  ;;  %v2710_v28 = vmul.f32 %v2592_v61, %v3135_v57  ;;  %v2714_v48 = vmul.f32 %v2592_v61, %v3136_v44  ;;  %v3143_v44 = vld [vmem:[#allocation26_spill] sm:$0xff] }
 0x21d   :  { %2059 = vst [vmem:[#allocation7 + $0xf8] sm:$0xff] %v2027_v55   ;;  %v2642_v55 = vmul.f32 %v2592_v61, %v2262_v8  ;;  %v2662_v8 = vmul.f32 %v2592_v61, %v2377_v0  ;;  %v2682_v0 = vmul.f32 %v2592_v61, %v2414_v54  ;;  %v2702_v54 = vmul.f32 %v2592_v61, %v2451_v41 }
 0x21e   :  { %v2718_v25 = vmul.f32 %v2592_v61, %v2224_v53  ;;  %v2722_v41 = vmul.f32 %v2592_v61, %v2228_v7  ;;  %v2726_v20 = vmul.f32 %v2592_v61, %v2232_v16  ;;  %v2730_v51 = vmul.f32 %v2592_v61, %v3137_v34 }
 0x21f   :  { %v2734_v57 = vmul.f32 %v2592_v61, %v3139_v35  ;;  %v2738_v53 = vmul.f32 %v2592_v61, %v2244_v2  ;;  %v2742_v7 = vmul.f32 %v2592_v61, %v2248_v14  ;;  %v2746_v16 = vmul.f32 %v2592_v61, %v2252_v36 }
 0x220   :  { %3138 = vst [vmem:[#allocation11_spill] sm:$0xff] %v2730_v51  ;;  %v2750_v34 = vmul.f32 %v2592_v61, %v3143_v44  ;;  %v3145_v51 = vld [vmem:[#allocation27_spill] sm:$0xff]  ;;  %v2758_v2 = vmul.f32 %v2592_v61, %v2264_v15  ;;  %v1172_v14 = vmul.f32 %v2592_v61, %v2268_v33  ;;  %v1174_v36 = vmul.f32 %v2592_v61, %v2276_v56 }
 0x221   :  { %3140 = vst [vmem:[#allocation13_spill] sm:$0xff] %v2738_v53  ;;  %v2754_v35 = vmul.f32 %v2592_v61, %v3145_v51  ;;  %v1175_v44 = vmul.f32 %v2592_v61, %v2280_v5  ;;  %v1176_v51 = vmul.f32 %v2592_v61, %v2286_v18  ;;  %v1178_v15 = vmul.f32 %v2592_v61, %v2300_v40  ;;  %v3151_v53 = vld [vmem:[#allocation34_spill] sm:$0xff] }
 0x222   :  { %3141 = vst [vmem:[#allocation15_spill] sm:$0xff] %v2742_v7  ;;  %v1173_v7 = vmul.f32 %v2592_v61, %v2272_v46  ;;  %v1179_v33 = vmul.f32 %v2592_v61, %v2525_v6  ;;  %v1180_v46 = vmul.f32 %v2592_v61, %v2532_v3  ;;  %v1181_v56 = vmul.f32 %v2592_v61, %v2539_v38 }
 0x223   :  { %3142 = vst [vmem:[#allocation16_spill] sm:$0xff] %v2746_v16  ;;  %v1182_v5 = vmul.f32 %v2592_v61, %v2546_v1  ;;  %v1183_v18 = vmul.f32 %v2592_v61, %v2554_v45  ;;  %v3150_v16 = vld [vmem:[#allocation33_spill] sm:$0xff]  ;;  %v1187_v3 = vmul.f32 %v2592_v61, %v3151_v53  ;;  %v2793_v38 = vadd.f32 %v2596_v26, %v1126_v23 }
 0x224   :  { %3144 = vst [vmem:[#allocation17_spill] sm:$0xff] %v2750_v34  ;;  %v3149_v34 = vld [vmem:[#allocation32_spill] sm:$0xff]  ;;  %v1186_v6 = vmul.f32 %v2592_v61, %v3150_v16  ;;  %v2796_v1 = vadd.f32 %v2596_v26, %v1127_v12  ;;  %v2799_v45 = vadd.f32 %v2596_v26, %v1128_v37  ;;  %v2808_v16 = vadd.f32 %v2596_v26, %v1131_v32 }
 0x225   :  { %3146 = vst [vmem:[#allocation18_spill] sm:$0xff] %v2754_v35  ;;  %v1177_v35 = vmul.f32 %v2592_v61, %v2292_v24  ;;  %v1185_v40 = vmul.f32 %v2592_v61, %v3149_v34  ;;  %v2805_v34 = vadd.f32 %v2596_v26, %v1130_v42  ;;  %v2814_v23 = vadd.f32 %v2596_v26, %v1133_v50 }
 0x226   :  { %3147 = vst [vmem:[#allocation20_spill] sm:$0xff] %v2758_v2  ;;  %v3148_v2 = vld [vmem:[#allocation31_spill] sm:$0xff]  ;;  %v2817_v12 = vadd.f32 %v2596_v26, %v1134_v59  ;;  %v2820_v37 = vadd.f32 %v2596_v26, %v1135_v4  ;;  %v2826_v42 = vadd.f32 %v2596_v26, %v1137_v31  ;;  %v2829_v32 = vadd.f32 %v2596_v26, %v1172_v14 }
 0x227   :  { %v1184_v24 = vmul.f32 %v2592_v61, %v3148_v2  ;;  %v2802_v2 = vadd.f32 %v2596_v26, %v1129_v19  ;;  %v2811_v61 = vadd.f32 %v2596_v26, %v1132_v22  ;;  %v2823_v19 = vadd.f32 %v2596_v26, %v1136_v13 }
 0x228   :  { %v2832_v22 = vadd.f32 %v2596_v26, %v1173_v7  ;;  %v2835_v50 = vadd.f32 %v2596_v26, %v1174_v36  ;;  %v2838_v59 = vadd.f32 %v2596_v26, %v1175_v44  ;;  %v2841_v4 = vadd.f32 %v2596_v26, %v1176_v51 }
 0x229   :  { %v2844_v13 = vadd.f32 %v2596_v26, %v1177_v35  ;;  %v2847_v31 = vadd.f32 %v2596_v26, %v1178_v15  ;;  %v2850_v53 = vadd.f32 %v2596_v26, %v1179_v33  ;;  %v2853_v7 = vadd.f32 %v2596_v26, %v1180_v46 }
 0x22a   :  { %v2856_v14 = vadd.f32 %v2596_v26, %v1181_v56  ;;  %v2859_v36 = vadd.f32 %v2596_v26, %v1182_v5  ;;  %v2862_v44 = vadd.f32 %v2596_v26, %v1183_v18  ;;  %v2865_v35 = vadd.f32 %v2596_v26, %v1184_v24 }
 0x22b   :  { %v2868_v51 = vadd.f32 %v2596_v26, %v1185_v40  ;;  %v2871_v15 = vadd.f32 %v2596_v26, %v1186_v6  ;;  %v2875_v33 = vadd.f32 %v2596_v26, %v2626_v58  ;;  %v2879_v46 = vadd.f32 %v2596_v26, %v2630_v60  ;;  %v3155_v40 = vld [vmem:[#allocation11_spill] sm:$0xff]  ;;  %v3158_v6 = vld [vmem:[#allocation13_spill] sm:$0xff] }
 0x22c   :  { %v2883_v56 = vadd.f32 %v2596_v26, %v2634_v49  ;;  %v2886_v5 = vadd.f32 %v2596_v26, %v1187_v3  ;;  %v2890_v18 = vadd.f32 %v2596_v26, %v2638_v47  ;;  %v2894_v24 = vadd.f32 %v2596_v26, %v2642_v55  ;;  %v3160_v3 = vld [vmem:[#allocation15_spill] sm:$0xff] }
 0x22d   :  { %v2898_v58 = vadd.f32 %v2596_v26, %v2646_v63  ;;  %v2902_v60 = vadd.f32 %v2596_v26, %v2650_v9  ;;  %v2906_v49 = vadd.f32 %v2596_v26, %v2654_v17  ;;  %v2910_v47 = vadd.f32 %v2596_v26, %v2658_v62 }
 0x22e   :  { %v2914_v55 = vadd.f32 %v2596_v26, %v2662_v8  ;;  %v2918_v63 = vadd.f32 %v2596_v26, %v2666_v30  ;;  %v2922_v9 = vadd.f32 %v2596_v26, %v2670_v39  ;;  %v2926_v17 = vadd.f32 %v2596_v26, %v2674_v52 }
 0x22f   :  { %v2930_v62 = vadd.f32 %v2596_v26, %v2678_v11  ;;  %v2934_v8 = vadd.f32 %v2596_v26, %v2682_v0  ;;  %v2938_v30 = vadd.f32 %v2596_v26, %v2686_v27  ;;  %v2942_v39 = vadd.f32 %v2596_v26, %v2690_v43 }
 0x230   :  { %v2946_v52 = vadd.f32 %v2596_v26, %v2694_v21  ;;  %v2950_v11 = vadd.f32 %v2596_v26, %v2698_v29  ;;  %v2954_v0 = vadd.f32 %v2596_v26, %v2702_v54  ;;  %v2958_v27 = vadd.f32 %v2596_v26, %v2706_v10 }
 0x231   :  { %v2962_v43 = vadd.f32 %v2596_v26, %v2710_v28  ;;  %v2966_v21 = vadd.f32 %v2596_v26, %v2714_v48  ;;  %v2970_v29 = vadd.f32 %v2596_v26, %v2718_v25  ;;  %v2974_v54 = vadd.f32 %v2596_v26, %v2722_v41 }
 0x232   :  { %v2978_v10 = vadd.f32 %v2596_v26, %v2726_v20  ;;  %v2982_v28 = vadd.f32 %v2596_v26, %v3155_v40  ;;  %v2986_v48 = vadd.f32 %v2596_v26, %v2734_v57  ;;  %v2990_v25 = vadd.f32 %v2596_v26, %v3158_v6 }
 0x233   :  { %3152 = vst [vmem:[#allocation22_spill] sm:$0xff] %v2970_v29  ;;  %v2994_v41 = vadd.f32 %v2596_v26, %v3160_v3  ;;  %v1258_v20 = vmax.f32 %v2796_v1, 0.0  ;;  %v1260_v40 = vmax.f32 %v2802_v2, 0.0  ;;  %v1262_v57 = vmax.f32 %v2808_v16, 0.0 }
 0x234   :  { %3153 = vst [vmem:[#allocation23_spill] sm:$0xff] %v2974_v54  ;;  %v1257_v54 = vmax.f32 %v2793_v38, 0.0  ;;  %v1264_v6 = vmax.f32 %v2814_v23, 0.0  ;;  %v1266_v3 = vmax.f32 %v2820_v37, 0.0  ;;  %v1267_v38 = vmax.f32 %v2823_v19, 0.0 }
 0x235   :  { %3154 = vst [vmem:[#allocation24_spill] sm:$0xff] %v2978_v10  ;;  %v1259_v10 = vmax.f32 %v2799_v45, 0.0  ;;  %v1268_v1 = vmax.f32 %v2826_v42, 0.0  ;;  %v1269_v45 = vmax.f32 %v2875_v33, 0.0  ;;  %v1270_v2 = vmax.f32 %v2879_v46, 0.0 }
 0x236   :  { %3156 = vst [vmem:[#allocation25_spill] sm:$0xff] %v2982_v28  ;;  %v1261_v28 = vmax.f32 %v2805_v34, 0.0  ;;  %v1271_v34 = vmax.f32 %v2883_v56, 0.0  ;;  %v1272_v16 = vmax.f32 %v2890_v18, 0.0  ;;  %v1274_v23 = vmax.f32 %v2898_v58, 0.0 }
 0x237   :  { %3157 = vst [vmem:[#allocation28_spill] sm:$0xff] %v2986_v48  ;;  %v1263_v48 = vmax.f32 %v2811_v61, 0.0  ;;  %v1273_v61 = vmax.f32 %v2894_v24, 0.0  ;;  %v1276_v37 = vmax.f32 %v2906_v49, 0.0  ;;  %v1277_v19 = vmax.f32 %v2910_v47, 0.0 }
 0x238   :  { %3159 = vst [vmem:[#allocation29_spill] sm:$0xff] %v2990_v25  ;;  %v1265_v25 = vmax.f32 %v2817_v12, 0.0  ;;  %v1275_v12 = vmax.f32 %v2902_v60, 0.0  ;;  %v1278_v42 = vmax.f32 %v2914_v55, 0.0  ;;  %v1279_v33 = vmax.f32 %v2918_v63, 0.0 }
 0x239   :  { %3161 = vst [vmem:[#allocation30_spill] sm:$0xff] %v2994_v41  ;;  %v1280_v46 = vmax.f32 %v2922_v9, 0.0  ;;  %v1281_v56 = vmax.f32 %v2926_v17, 0.0  ;;  %v1282_v18 = vmax.f32 %v2930_v62, 0.0  ;;  %v1303_v24 = vmax.f32 %v2829_v32, 0.0 }
 0x23a   :  { %v1304_v58 = vmax.f32 %v2832_v22, 0.0  ;;  %v1305_v60 = vmax.f32 %v2835_v50, 0.0  ;;  %v1306_v49 = vmax.f32 %v2838_v59, 0.0  ;;  %v1307_v47 = vmax.f32 %v2841_v4, 0.0 }
 0x23b   :  { %v1308_v55 = vmax.f32 %v2844_v13, 0.0  ;;  %v1872_v41 = vpack.c.bf16 %v1258_v20, %v1257_v54  ;;  %v1309_v63 = vmax.f32 %v2847_v31, 0.0  ;;  %v1877_v9 = vpack.c.bf16 %v1260_v40, %v1259_v10 }
 0x23c   :  { %v1882_v29 = vpack.c.bf16 %v1262_v57, %v1261_v28  ;;  %v1887_v17 = vpack.c.bf16 %v1264_v6, %v1263_v48  ;;  %v1310_v62 = vmax.f32 %v2850_v53, 0.0  ;;  %v1311_v32 = vmax.f32 %v2853_v7, 0.0  ;;  %v3162_v57 = vld [vmem:[#allocation16_spill] sm:$0xff] }
 0x23d   :  { %v1312_v22 = vmax.f32 %v2856_v14, 0.0  ;;  %1873 = vst [vmem:[#allocation7] sm:$0xff] %v1872_v41   ;;  %v1892_v50 = vpack.c.bf16 %v1266_v3, %v1265_v25  ;;  %v1313_v59 = vmax.f32 %v2859_v36, 0.0  ;;  %v1314_v4 = vmax.f32 %v2862_v44, 0.0 }
 0x23e   :  { %v1315_v13 = vmax.f32 %v2865_v35, 0.0  ;;  %2029 = vst [vmem:[#allocation7 + $0x8] sm:$0xff] %v1877_v9   ;;  %v1897_v54 = vpack.c.bf16 %v1268_v1, %v1267_v38  ;;  %v1316_v31 = vmax.f32 %v2868_v51, 0.0  ;;  %v1317_v10 = vmax.f32 %v2871_v15, 0.0  ;;  %v3163_v1 = vld [vmem:[#allocation17_spill] sm:$0xff] }
 0x23f   :  { %v1318_v53 = vmax.f32 %v2886_v5, 0.0  ;;  %2030 = vst [vmem:[#allocation7 + $0x10] sm:$0xff] %v1882_v29   ;;  %v1902_v7 = vpack.c.bf16 %v1270_v2, %v1269_v45  ;;  %v1283_v14 = vmax.f32 %v2934_v8, 0.0  ;;  %v1284_v28 = vmax.f32 %v2938_v30, 0.0 }
 0x240   :  { %v1285_v36 = vmax.f32 %v2942_v39, 0.0  ;;  %2031 = vst [vmem:[#allocation7 + $0x18] sm:$0xff] %v1887_v17   ;;  %v1907_v44 = vpack.c.bf16 %v1272_v16, %v1271_v34  ;;  %v1912_v35 = vpack.c.bf16 %v1274_v23, %v1273_v61  ;;  %v1917_v48 = vpack.c.bf16 %v1276_v37, %v1275_v12  ;;  %v3164_v16 = vld [vmem:[#allocation18_spill] sm:$0xff]  ;;  %v3166_v37 = vld [vmem:[#allocation20_spill] sm:$0xff] }
 0x241   :  { %2032 = vst [vmem:[#allocation7 + $0x20] sm:$0xff] %v1892_v50   ;;  %v1987_v25 = vpack.c.bf16 %v1304_v58, %v1303_v24  ;;  %v1992_v41 = vpack.c.bf16 %v1306_v49, %v1305_v60  ;;  %v1997_v51 = vpack.c.bf16 %v1308_v55, %v1307_v47  ;;  %v2002_v15 = vpack.c.bf16 %v1310_v62, %v1309_v63  ;;  %v3165_v12 = vld [vmem:[#allocation22_spill] sm:$0xff]  ;;  %v3169_v24 = vld [vmem:[#allocation25_spill] sm:$0xff] }
 0x242   :  { %2033 = vst [vmem:[#allocation7 + $0x28] sm:$0xff] %v1897_v54   ;;  %v2007_v20 = vpack.c.bf16 %v1312_v22, %v1311_v32  ;;  %v2012_v5 = vpack.c.bf16 %v1314_v4, %v1313_v59  ;;  %v1286_v29 = vmax.f32 %v2946_v52, 0.0  ;;  %v1922_v8 = vpack.c.bf16 %v1278_v42, %v1277_v19  ;;  %v3167_v42 = vld [vmem:[#allocation23_spill] sm:$0xff]  ;;  %v3172_v47 = vld [vmem:[#allocation30_spill] sm:$0xff] }
 0x243   :  { %2034 = vst [vmem:[#allocation7 + $0x30] sm:$0xff] %v1902_v7   ;;  %v2017_v40 = vpack.c.bf16 %v1316_v31, %v1315_v13  ;;  %v2022_v30 = vpack.c.bf16 %v1318_v53, %v1317_v10  ;;  %v1235_v39 = vadd.f32 %v2596_v26, %v3162_v57  ;;  %v1287_v6 = vmax.f32 %v2950_v11, 0.0 }
 0x244   :  { %v1288_v3 = vmax.f32 %v2954_v0, 0.0  ;;  %2035 = vst [vmem:[#allocation7 + $0x38] sm:$0xff] %v1907_v44   ;;  %v1927_v38 = vpack.c.bf16 %v1280_v46, %v1279_v33  ;;  %v1236_v45 = vadd.f32 %v2596_v26, %v3163_v1  ;;  %v1289_v2 = vmax.f32 %v2958_v27, 0.0  ;;  %v3168_v46 = vld [vmem:[#allocation24_spill] sm:$0xff] }
 0x245   :  { %v1290_v52 = vmax.f32 %v2962_v43, 0.0  ;;  %2036 = vst [vmem:[#allocation7 + $0x40] sm:$0xff] %v1912_v35   ;;  %v1932_v34 = vpack.c.bf16 %v1282_v18, %v1281_v56  ;;  %v1237_v61 = vadd.f32 %v2596_v26, %v3164_v16  ;;  %v1291_v23 = vmax.f32 %v2966_v21, 0.0  ;;  %v3170_v18 = vld [vmem:[#allocation28_spill] sm:$0xff]  ;;  %v3171_v21 = vld [vmem:[#allocation29_spill] sm:$0xff] }
 0x246   :  { %v1292_v11 = vmax.f32 %v3165_v12, 0.0  ;;  %2037 = vst [vmem:[#allocation7 + $0x48] sm:$0xff] %v1917_v48   ;;  %v1937_v0 = vpack.c.bf16 %v1284_v28, %v1283_v14  ;;  %v1238_v19 = vadd.f32 %v2596_v26, %v3166_v37  ;;  %v1293_v33 = vmax.f32 %v3167_v42, 0.0 }
 0x247   :  { %v1294_v27 = vmax.f32 %v3168_v46, 0.0  ;;  %2038 = vst [vmem:[#allocation7 + $0x50] sm:$0xff] %v1922_v8   ;;  %v1942_v43 = vpack.c.bf16 %v1286_v29, %v1285_v36  ;;  %v1295_v56 = vmax.f32 %v3169_v24, 0.0  ;;  %v1296_v58 = vmax.f32 %v3170_v18, 0.0 }
 0x248   :  { %2039 = vst [vmem:[#allocation7 + $0x58] sm:$0xff] %v1927_v38   ;;  %v1947_v60 = vpack.c.bf16 %v1288_v3, %v1287_v6  ;;  %v1297_v49 = vmax.f32 %v3171_v21, 0.0  ;;  %v1298_v55 = vmax.f32 %v3172_v47, 0.0  ;;  %v1952_v63 = vpack.c.bf16 %v1290_v52, %v1289_v2 }
 0x249   :  { %2040 = vst [vmem:[#allocation7 + $0x60] sm:$0xff] %v1932_v34   ;;  %v1299_v9 = vmax.f32 %v1235_v39, 0.0  ;;  %v1300_v26 = vmax.f32 %v1236_v45, 0.0  ;;  %v1957_v17 = vpack.c.bf16 %v1292_v11, %v1291_v23  ;;  %v1301_v62 = vmax.f32 %v1237_v61, 0.0 }
 0x24a   :  { %2041 = vst [vmem:[#allocation7 + $0x68] sm:$0xff] %v1937_v0   ;;  %v1302_v32 = vmax.f32 %v1238_v19, 0.0  ;;  %v1962_v22 = vpack.c.bf16 %v1294_v27, %v1293_v33  ;;  %v1967_v50 = vpack.c.bf16 %v1296_v58, %v1295_v56  ;;  %v1972_v59 = vpack.c.bf16 %v1298_v55, %v1297_v49 }
 0x24b   :  { %2042 = vst [vmem:[#allocation7 + $0x70] sm:$0xff] %v1942_v43   ;;  %v1977_v4 = vpack.c.bf16 %v1300_v26, %v1299_v9 }
 0x24c   :  { %2043 = vst [vmem:[#allocation7 + $0x78] sm:$0xff] %v1947_v60   ;;  %v1982_v13 = vpack.c.bf16 %v1302_v32, %v1301_v62 }
 0x24d   :  { %2044 = vst [vmem:[#allocation7 + $0x80] sm:$0xff] %v1952_v63  }
 0x24e   :  { %2045 = vst [vmem:[#allocation7 + $0x88] sm:$0xff] %v1957_v17  }
 0x24f   :  { %2046 = vst [vmem:[#allocation7 + $0x90] sm:$0xff] %v1962_v22  }
 0x250   :  { %2047 = vst [vmem:[#allocation7 + $0x98] sm:$0xff] %v1967_v50  }
 0x251   :  { %2048 = vst [vmem:[#allocation7 + $0xa0] sm:$0xff] %v1972_v59  }
 0x252   :  { %2049 = vst [vmem:[#allocation7 + $0xa8] sm:$0xff] %v1977_v4  }
 0x253   :  { %2050 = vst [vmem:[#allocation7 + $0xb0] sm:$0xff] %v1982_v13  }
 0x254   :  { %2051 = vst [vmem:[#allocation7 + $0xb8] sm:$0xff] %v1987_v25  }
 0x255   :  { %2052 = vst [vmem:[#allocation7 + $0xc0] sm:$0xff] %v1992_v41  }
 0x256   :  { %2053 = vst [vmem:[#allocation7 + $0xc8] sm:$0xff] %v1997_v51  }
 0x257   :  { %2054 = vst [vmem:[#allocation7 + $0xd0] sm:$0xff] %v2002_v15  }
 0x258   :  { %2055 = vst [vmem:[#allocation7 + $0xd8] sm:$0xff] %v2007_v20  }
 0x259   :  { %2056 = vst [vmem:[#allocation7 + $0xe0] sm:$0xff] %v2012_v5  }
 0x25a   :  { %2057 = vst [vmem:[#allocation7 + $0xe8] sm:$0xff] %v2017_v40  }
 0x25b   :  { %2058 = vst [vmem:[#allocation7 + $0xf0] sm:$0xff] %v2022_v30  }
 0x25c   :  { %1461 = dma.vmem_to_hbm [thread:$0]  %s1454_s3, 4096, %s1456_s7, [#allocation4], %s2167_s27, %s2167_s27, %s2168_s28  }
 0x25d   :  { %2161 = dma.done.wait [#allocation4], 4096  }
 0x25e   :  { %2162 = vsyncadd [#allocation4], 4294963200 }
 0x25f   :  { %1466 = vsyncpa [#allocation3], 1 }
 0x260   :  { %1467 = vsyncpa [#allocation6], 1 }
 0x261   :  { %1468 = vsyncpa [#allocation4], 1 }

</bundles_post_ra>
